<compile_context>
chip_gen: v7x
topology: tpu7x:2x2x1
jax: 0.10.0
libtpu: 0.0.40
codegen_flags: <defaults>
</compile_context>

<pallas_src>
import numpy as np
import jax
import jax.numpy as jnp
from jax.experimental import pallas as pl
from jax.experimental.pallas import tpu as pltpu

EPS = 1e-5   # nn.BatchNorm2d default eps
LANE = 128   # TPU lane width


# ---------------------------------------------------------------------------
# Pallas kernels
# ---------------------------------------------------------------------------
def _conv1_kernel(x_ref, w_ref, y_ref, ss_ref, xf_ref, acc_ref):
    """3x3 conv (9 shifted bf16 matmuls, f32 acc) + per-image BN partial sums.

    x_ref : (1, H+2, W+2, Ci)  bf16   spatially padded input image
    w_ref : (3, 3, Ci, Co)     bf16   conv weight (ky, kx, cin, cout)
    y_ref : (1, H, W, Co)      f32    raw conv output (pre-BN)
    ss_ref: (1, 2, Co)         f32    [sum, sum_of_squares] over this image
    xf_ref: (H+2, W+2, Ci)     f32    scratch (upcast halo tile)
    acc_ref:(H*W, Co)          f32    scratch (matmul accumulator)
    """
    Hp, Wp, Ci = xf_ref.shape
    H, W = Hp - 2, Wp - 2
    Co = acc_ref.shape[-1]

    # Upcast once so the 9 shifted window reads are plain 32-bit slices.
    xf_ref[...] = x_ref[0].astype(jnp.float32)
    acc_ref[...] = jnp.zeros_like(acc_ref)

    for ky in range(3):
        for kx in range(3):
            tap = xf_ref[ky:ky + H, kx:kx + W, :].astype(jnp.bfloat16)
            acc_ref[...] += jnp.dot(tap.reshape(H * W, Ci), w_ref[ky, kx],
                                    preferred_element_type=jnp.float32)

    y = acc_ref[...]                                   # (H*W, Co) f32
    y_ref[0] = y.reshape(H, W, Co)
    # single-pass stats: sum and sum-of-squares (global mean/var finished on host)
    ss_ref[0, 0:1, :] = jnp.sum(y, axis=0, keepdims=True)
    ss_ref[0, 1:2, :] = jnp.sum(y * y, axis=0, keepdims=True)


def _conv2_kernel(y1_ref, w_ref, sc_ref, sh_ref, m_ref,
                  y2_ref, ss_ref, a_ref, acc_ref):
    """Fused BN1-apply + ReLU + 3x3 conv2 + per-image BN2 partial sums.

    y1_ref: (1, H+2, W+2, Ci) f32    spatially padded conv1 output
    w_ref : (3, 3, Ci, Co)    bf16
    sc_ref, sh_ref: (1, 1, Ci) f32   BN1 scale / shift (global batch stats)
    m_ref : (H+2, W+2, 1)     f32    interior mask (zeroes the conv padding ring)
    y2_ref: (1, H, W, Co)     f32    raw conv2 output (pre-BN2)
    ss_ref: (1, 2, Co)        f32
    a_ref : (H+2, W+2, Ci)    f32    scratch (post BN1+ReLU activation, padded)
    acc_ref:(H*W, Co)         f32    scratch (accumulator)
    """
    Hp, Wp, Ci = a_ref.shape
    H, W = Hp - 2, Wp - 2
    Co = acc_ref.shape[-1]

    # BN1 + ReLU applied on the fly; mask restores true zero padding outside
    # the image interior (relu(shift) would otherwise leak into the halo).
    a_ref[...] = (jnp.maximum(y1_ref[0] * sc_ref[...] + sh_ref[...], 0.0)
                  * m_ref[...])
    acc_ref[...] = jnp.zeros_like(acc_ref)

    for ky in range(3):
        for kx in range(3):
            tap = a_ref[ky:ky + H, kx:kx + W, :].astype(jnp.bfloat16)
            acc_ref[...] += jnp.dot(tap.reshape(H * W, Ci), w_ref[ky, kx],
                                    preferred_element_type=jnp.float32)

    y = acc_ref[...]
    y2_ref[0] = y.reshape(H, W, Co)
    ss_ref[0, 0:1, :] = jnp.sum(y, axis=0, keepdims=True)
    ss_ref[0, 1:2, :] = jnp.sum(y * y, axis=0, keepdims=True)


def _finalize_kernel(y_ref, idn_ref, sc_ref, sh_ref, o_ref):
    """BN2 apply + residual add + ReLU (single fused lane-dense store)."""
    o_ref[0] = jnp.maximum(y_ref[0] * sc_ref[...] + sh_ref[...] + idn_ref[0], 0.0)


# ---------------------------------------------------------------------------
# Host-side glue (plain JAX): layout, padding, weight reshape, BN finalize
# ---------------------------------------------------------------------------
def _round_up(n, m):
    return ((n + m - 1) // m) * m


def _pad_last(x, target):
    pad = target - x.shape[-1]
    if pad == 0:
        return x
    cfg = [(0, 0)] * (x.ndim - 1) + [(0, pad)]
    return jnp.pad(x, cfg)


def _conv_weight(w, ci_p, co_p):
    """PyTorch conv weight (Cout, Cin, 3, 3) -> (3, 3, ci_p, co_p) bf16."""
    Cout, Cin, _, _ = w.shape
    wt = jnp.transpose(w, (2, 3, 1, 0))                         # (3,3,Cin,Cout)
    wt = jnp.pad(wt, ((0, 0), (0, 0), (0, ci_p - Cin), (0, co_p - Cout)))
    return wt.astype(jnp.bfloat16)


def _bn_affine(ss, gamma, beta, n, c_pad):
    """Partial (sum, sumsq) per image -> per-channel (scale, shift), f32."""
    s = jnp.sum(ss[:, 0, :], axis=0)
    sq = jnp.sum(ss[:, 1, :], axis=0)
    mean = s / n
    var = jnp.maximum(sq / n - mean * mean, 0.0)                # biased, like torch
    g = _pad_last(gamma.astype(jnp.float32), c_pad)
    b = _pad_last(beta.astype(jnp.float32), c_pad)
    scale = g * jax.lax.rsqrt(var + EPS)
    shift = b - mean * scale
    return scale.reshape(1, 1, c_pad), shift.reshape(1, 1, c_pad)


def res_block_forward(x_nchw, params):
    """Pallas implementation of ResBlock.forward (downsample=None, stride=1)."""
    w1, g1, b1, w2, g2, b2 = params
    B, Cin, H, W = x_nchw.shape
    Cmid = w1.shape[0]
    Cout = w2.shape[0]
    assert Cin == Cout, "residual add requires inch == outch (downsample is None)"

    Cin_p = _round_up(Cin, LANE)
    Cmid_p = _round_up(Cmid, LANE)
    Cout_p = _round_up(Cout, LANE)
    N = B * H * W

    # Layout + padding (cheap XLA ops).
    # TODO(synk): accepting NHWC at the API boundary would remove the two
    #             NCHW<->NHWC transposes; kept NCHW to match the PyTorch spec.
    x_nhwc = jnp.transpose(x_nchw, (0, 2, 3, 1)).astype(jnp.float32)
    x_res = _pad_last(x_nhwc, Cout_p)                            # identity path
    xp = jnp.pad(_pad_last(x_nhwc, Cin_p),
                 ((0, 0), (1, 1), (1, 1), (0, 0))).astype(jnp.bfloat16)
    w1m = _conv_weight(w1, Cin_p, Cmid_p)
    w2m = _conv_weight(w2, Cmid_p, Cout_p)
    interior = jnp.pad(jnp.ones((H, W, 1), jnp.float32),
                       ((1, 1), (1, 1), (0, 0)))                 # (H+2, W+2, 1)

    cparams = pltpu.CompilerParams(
        dimension_semantics=("parallel",),           # batch tiles are independent
        vmem_limit_bytes=64 * 1024 * 1024)

    # ---- stage 1: conv1 + BN1 partial sums ------------------------------
    y1, ss1 = pl.pallas_call(
        _conv1_kernel,
        out_shape=(jax.ShapeDtypeStruct((B, H, W, Cmid_p), jnp.float32),
                   jax.ShapeDtypeStruct((B, 2, Cmid_p), jnp.float32)),
        grid_spec=pltpu.PrefetchScalarGridSpec(
            num_scalar_prefetch=0,
            grid=(B,),
            in_specs=[
                pl.BlockSpec((1, H + 2, W + 2, Cin_p), lambda b: (b, 0, 0, 0)),
                pl.BlockSpec((3, 3, Cin_p, Cmid_p), lambda b: (0, 0, 0, 0)),
            ],
            out_specs=[
                pl.BlockSpec((1, H, W, Cmid_p), lambda b: (b, 0, 0, 0)),
                pl.BlockSpec((1, 2, Cmid_p), lambda b: (b, 0, 0)),
            ],
            scratch_shapes=[
                pltpu.VMEM((H + 2, W + 2, Cin_p), jnp.float32),
                pltpu.VMEM((H * W, Cmid_p), jnp.float32),
            ]),
        compiler_params=cparams,
    )(xp, w1m)

    scale1, shift1 = _bn_affine(ss1, g1, b1, N, Cmid_p)
    # TODO(synk): this spatial pad round-trips y1 through HBM once; could be
    #             fused by letting stage 1 write into a pre-padded buffer.
    y1p = jnp.pad(y1, ((0, 0), (1, 1), (1, 1), (0, 0)))

    # ---- stage 2: BN1+ReLU (fused) + conv2 + BN2 partial sums ------------
    y2, ss2 = pl.pallas_call(
        _conv2_kernel,
        out_shape=(jax.ShapeDtypeStruct((B, H, W, Cout_p), jnp.float32),
                   jax.ShapeDtypeStruct((B, 2, Cout_p), jnp.float32)),
        grid_spec=pltpu.PrefetchScalarGridSpec(
            num_scalar_prefetch=0,
            grid=(B,),
            in_specs=[
                pl.BlockSpec((1, H + 2, W + 2, Cmid_p), lambda b: (b, 0, 0, 0)),
                pl.BlockSpec((3, 3, Cmid_p, Cout_p), lambda b: (0, 0, 0, 0)),
                pl.BlockSpec((1, 1, Cmid_p), lambda b: (0, 0, 0)),
                pl.BlockSpec((1, 1, Cmid_p), lambda b: (0, 0, 0)),
                pl.BlockSpec((H + 2, W + 2, 1), lambda b: (0, 0, 0)),
            ],
            out_specs=[
                pl.BlockSpec((1, H, W, Cout_p), lambda b: (b, 0, 0, 0)),
                pl.BlockSpec((1, 2, Cout_p), lambda b: (b, 0, 0)),
            ],
            scratch_shapes=[
                pltpu.VMEM((H + 2, W + 2, Cmid_p), jnp.float32),
                pltpu.VMEM((H * W, Cout_p), jnp.float32),
            ]),
        compiler_params=cparams,
    )(y1p, w2m, scale1, shift1, interior)

    scale2, shift2 = _bn_affine(ss2, g2, b2, N, Cout_p)

    # ---- stage 3: BN2 apply + residual + ReLU ----------------------------
    out = pl.pallas_call(
        _finalize_kernel,
        out_shape=jax.ShapeDtypeStruct((B, H, W, Cout_p), jnp.float32),
        grid_spec=pltpu.PrefetchScalarGridSpec(
            num_scalar_prefetch=0,
            grid=(B,),
            in_specs=[
                pl.BlockSpec((1, H, W, Cout_p), lambda b: (b, 0, 0, 0)),
                pl.BlockSpec((1, H, W, Cout_p), lambda b: (b, 0, 0, 0)),
                pl.BlockSpec((1, 1, Cout_p), lambda b: (0, 0, 0)),
                pl.BlockSpec((1, 1, Cout_p), lambda b: (0, 0, 0)),
            ],
            out_specs=pl.BlockSpec((1, H, W, Cout_p), lambda b: (b, 0, 0, 0))),
        compiler_params=cparams,
    )(y2, x_res, scale2, shift2)

    return jnp.transpose(out[..., :Cout], (0, 3, 1, 2))   # back to NCHW


# ---------------------------------------------------------------------------
# Pure-JAX reference (mirrors the PyTorch forward) for a sanity check
# ---------------------------------------------------------------------------
def _ref_forward(x_nchw, params):
    w1, g1, b1, w2, g2, b2 = params

    def conv(x, w):
        return jax.lax.conv_general_dilated(
            x, w, window_strides=(1, 1), padding=[(1, 1), (1, 1)],
            dimension_numbers=("NCHW", "OIHW", "NCHW"),
            precision=jax.lax.Precision.HIGHEST)

    def bn(y, g, b):
        mean = jnp.mean(y, axis=(0, 2, 3), keepdims=True)
        var = jnp.mean((y - mean) ** 2, axis=(0, 2, 3), keepdims=True)
        return ((y - mean) * jax.lax.rsqrt(var + EPS)
                * g.reshape(1, -1, 1, 1) + b.reshape(1, -1, 1, 1))

    h = jax.nn.relu(bn(conv(x_nchw, w1), g1, b1))
    out = bn(conv(h, w2), g2, b2) + x_nchw
    return jax.nn.relu(out)


# ---------------------------------------------------------------------------
if __name__ == "__main__":
    key = jax.random.PRNGKey(0)
    B, Cin, H, W = 2, 4, 16, 16
    Cout = Cin            # residual add requires outch == inch
    Cmid = 2 * Cin        # branch0 widens to inch * 2

    ks = jax.random.split(key, 7)
    x = jax.random.normal(ks[0], (B, Cin, H, W), jnp.float32)
    w1 = jax.random.normal(ks[1], (Cmid, Cin, 3, 3), jnp.float32) * (2.0 / (Cin * 9)) ** 0.5
    w2 = jax.random.normal(ks[2], (Cout, Cmid, 3, 3), jnp.float32) * (2.0 / (Cmid * 9)) ** 0.5
    g1 = 1.0 + 0.1 * jax.random.normal(ks[3], (Cmid,), jnp.float32)
    b1 = 0.1 * jax.random.normal(ks[4], (Cmid,), jnp.float32)
    g2 = 1.0 + 0.1 * jax.random.normal(ks[5], (Cout,), jnp.float32)
    b2 = 0.1 * jax.random.normal(ks[6], (Cout,), jnp.float32)
    params = (w1, g1, b1, w2, g2, b2)

    out = res_block_forward(x, params)
    out = jax.block_until_ready(out)
    assert out.shape == (B, Cout, H, W)

    ref = _ref_forward(x, params)
    np.testing.assert_allclose(np.asarray(out), np.asarray(ref), rtol=2e-2, atol=2e-2)

    print("KERNEL_OK")
</pallas_src>

<mosaic_0001>
module attributes {stable_mosaic.version = 11 : i64} {
  func.func @_conv1_kernel(%arg0: i32, %arg1: memref<1x18x18x128xbf16, #tpu.memory_space<vmem>>, %arg2: memref<3x3x128x128xbf16, #tpu.memory_space<vmem>>, %arg3: memref<1x16x16x128xf32, #tpu.memory_space<vmem>>, %arg4: memref<1x2x128xf32, #tpu.memory_space<vmem>>, %arg5: memref<18x18x128xf32, #tpu.memory_space<vmem>>, %arg6: memref<256x128xf32, #tpu.memory_space<vmem>>) attributes {dimension_semantics = [#tpu.dimension_semantics<parallel>], iteration_bounds = array<i64: 2>, scalar_prefetch = 0 : i64, scratch_operands = 2 : i64, tpu.core_type = #tpu.core_type<tc>, window_params = [{transform_indices = @transform_0, window_bounds = array<i64: 1, 18, 18, 128>}, {pipeline_mode = #tpu.pipeline_mode<synchronous>, transform_indices = @transform_1, window_bounds = array<i64: 3, 3, 128, 128>}, {transform_indices = @transform_2, window_bounds = array<i64: 1, 16, 16, 128>}, {transform_indices = @transform_3, window_bounds = array<i64: 1, 2, 128>}]} {
    %c0 = arith.constant 0 : index
    %c0_0 = arith.constant 0 : index
    %c0_1 = arith.constant 0 : index
    %c0_2 = arith.constant 0 : index
    %0 = vector.load %arg1[%c0, %c0_0, %c0_1, %c0_2] : memref<1x18x18x128xbf16, #tpu.memory_space<vmem>>, vector<1x18x18x128xbf16>
    %1 = vector.shape_cast %0 : vector<1x18x18x128xbf16> to vector<18x18x128xbf16>
    %2 = arith.extf %1 : vector<18x18x128xbf16> to vector<18x18x128xf32>
    %c0_3 = arith.constant 0 : index
    %c0_4 = arith.constant 0 : index
    %c0_5 = arith.constant 0 : index
    %3 = vector.load %arg5[%c0_3, %c0_4, %c0_5] : memref<18x18x128xf32, #tpu.memory_space<vmem>>, vector<18x18x128xf32>
    tpu.vector_store %arg5[%c0_3, %c0_4, %c0_5], %2 {strides = array<i32>} : memref<18x18x128xf32, #tpu.memory_space<vmem>>, vector<18x18x128xf32>,
    %cst = arith.constant 0.000000e+00 : f32
    %4 = vector.broadcast %cst : f32 to vector<256x128xf32>
    %c0_6 = arith.constant 0 : index
    %c0_7 = arith.constant 0 : index
    %5 = vector.load %arg6[%c0_6, %c0_7] : memref<256x128xf32, #tpu.memory_space<vmem>>, vector<256x128xf32>
    tpu.vector_store %arg6[%c0_6, %c0_7], %4 {strides = array<i32>} : memref<256x128xf32, #tpu.memory_space<vmem>>, vector<256x128xf32>,
    %c0_8 = arith.constant 0 : index
    %c0_9 = arith.constant 0 : index
    %c0_10 = arith.constant 0 : index
    %6 = vector.load %arg5[%c0_8, %c0_9, %c0_10] : memref<18x18x128xf32, #tpu.memory_space<vmem>>, vector<16x16x128xf32>
    %7 = arith.truncf %6 : vector<16x16x128xf32> to vector<16x16x128xbf16>
    %c0_11 = arith.constant 0 : index
    %c0_12 = arith.constant 0 : index
    %8 = vector.load %arg6[%c0_11, %c0_12] : memref<256x128xf32, #tpu.memory_space<vmem>>, vector<256x128xf32>
    %9 = vector.shape_cast %7 : vector<16x16x128xbf16> to vector<256x128xbf16>
    %c0_13 = arith.constant 0 : index
    %c0_14 = arith.constant 0 : index
    %c0_15 = arith.constant 0 : index
    %c0_16 = arith.constant 0 : index
    %10 = vector.load %arg2[%c0_13, %c0_14, %c0_15, %c0_16] : memref<3x3x128x128xbf16, #tpu.memory_space<vmem>>, vector<1x1x128x128xbf16>
    %11 = vector.shape_cast %10 : vector<1x1x128x128xbf16> to vector<128x128xbf16>
    %cst_17 = arith.constant dense<0.000000e+00> : vector<256x128xf32>
    %12 = tpu.matmul %9, %11, %cst_17 {dimension_numbers = #tpu.dot_dimension_numbers<[1], [0], [0], [1], [0, 0, 1, 1], [], []>} : vector<256x128xbf16>, vector<128x128xbf16>, vector<256x128xf32> -> vector<256x128xf32>
    %13 = arith.addf %8, %12 : vector<256x128xf32>
    %c0_18 = arith.constant 0 : index
    %c0_19 = arith.constant 0 : index
    %14 = vector.load %arg6[%c0_18, %c0_19] : memref<256x128xf32, #tpu.memory_space<vmem>>, vector<256x128xf32>
    tpu.vector_store %arg6[%c0_18, %c0_19], %13 {strides = array<i32>} : memref<256x128xf32, #tpu.memory_space<vmem>>, vector<256x128xf32>,
    %c0_20 = arith.constant 0 : index
    %c1 = arith.constant 1 : index
    %c0_21 = arith.constant 0 : index
    %15 = vector.load %arg5[%c0_20, %c1, %c0_21] : memref<18x18x128xf32, #tpu.memory_space<vmem>>, vector<16x16x128xf32>
    %16 = arith.truncf %15 : vector<16x16x128xf32> to vector<16x16x128xbf16>
    %c0_22 = arith.constant 0 : index
    %c0_23 = arith.constant 0 : index
    %17 = vector.load %arg6[%c0_22, %c0_23] : memref<256x128xf32, #tpu.memory_space<vmem>>, vector<256x128xf32>
    %18 = vector.shape_cast %16 : vector<16x16x128xbf16> to vector<256x128xbf16>
    %c0_24 = arith.constant 0 : index
    %c1_25 = arith.constant 1 : index
    %c0_26 = arith.constant 0 : index
    %c0_27 = arith.constant 0 : index
    %19 = vector.load %arg2[%c0_24, %c1_25, %c0_26, %c0_27] : memref<3x3x128x128xbf16, #tpu.memory_space<vmem>>, vector<1x1x128x128xbf16>
    %20 = vector.shape_cast %19 : vector<1x1x128x128xbf16> to vector<128x128xbf16>
    %cst_28 = arith.constant dense<0.000000e+00> : vector<256x128xf32>
    %21 = tpu.matmul %18, %20, %cst_28 {dimension_numbers = #tpu.dot_dimension_numbers<[1], [0], [0], [1], [0, 0, 1, 1], [], []>} : vector<256x128xbf16>, vector<128x128xbf16>, vector<256x128xf32> -> vector<256x128xf32>
    %22 = arith.addf %17, %21 : vector<256x128xf32>
    %c0_29 = arith.constant 0 : index
    %c0_30 = arith.constant 0 : index
    %23 = vector.load %arg6[%c0_29, %c0_30] : memref<256x128xf32, #tpu.memory_space<vmem>>, vector<256x128xf32>
    tpu.vector_store %arg6[%c0_29, %c0_30], %22 {strides = array<i32>} : memref<256x128xf32, #tpu.memory_space<vmem>>, vector<256x128xf32>,
    %c0_31 = arith.constant 0 : index
    %c2 = arith.constant 2 : index
    %c0_32 = arith.constant 0 : index
    %24 = vector.load %arg5[%c0_31, %c2, %c0_32] : memref<18x18x128xf32, #tpu.memory_space<vmem>>, vector<16x16x128xf32>
    %25 = arith.truncf %24 : vector<16x16x128xf32> to vector<16x16x128xbf16>
    %c0_33 = arith.constant 0 : index
    %c0_34 = arith.constant 0 : index
    %26 = vector.load %arg6[%c0_33, %c0_34] : memref<256x128xf32, #tpu.memory_space<vmem>>, vector<256x128xf32>
    %27 = vector.shape_cast %25 : vector<16x16x128xbf16> to vector<256x128xbf16>
    %c0_35 = arith.constant 0 : index
    %c2_36 = arith.constant 2 : index
    %c0_37 = arith.constant 0 : index
    %c0_38 = arith.constant 0 : index
    %28 = vector.load %arg2[%c0_35, %c2_36, %c0_37, %c0_38] : memref<3x3x128x128xbf16, #tpu.memory_space<vmem>>, vector<1x1x128x128xbf16>
    %29 = vector.shape_cast %28 : vector<1x1x128x128xbf16> to vector<128x128xbf16>
    %cst_39 = arith.constant dense<0.000000e+00> : vector<256x128xf32>
    %30 = tpu.matmul %27, %29, %cst_39 {dimension_numbers = #tpu.dot_dimension_numbers<[1], [0], [0], [1], [0, 0, 1, 1], [], []>} : vector<256x128xbf16>, vector<128x128xbf16>, vector<256x128xf32> -> vector<256x128xf32>
    %31 = arith.addf %26, %30 : vector<256x128xf32>
    %c0_40 = arith.constant 0 : index
    %c0_41 = arith.constant 0 : index
    %32 = vector.load %arg6[%c0_40, %c0_41] : memref<256x128xf32, #tpu.memory_space<vmem>>, vector<256x128xf32>
    tpu.vector_store %arg6[%c0_40, %c0_41], %31 {strides = array<i32>} : memref<256x128xf32, #tpu.memory_space<vmem>>, vector<256x128xf32>,
    %c1_42 = arith.constant 1 : index
    %c0_43 = arith.constant 0 : index
    %c0_44 = arith.constant 0 : index
    %33 = vector.load %arg5[%c1_42, %c0_43, %c0_44] : memref<18x18x128xf32, #tpu.memory_space<vmem>>, vector<16x16x128xf32>
    %34 = arith.truncf %33 : vector<16x16x128xf32> to vector<16x16x128xbf16>
    %c0_45 = arith.constant 0 : index
    %c0_46 = arith.constant 0 : index
    %35 = vector.load %arg6[%c0_45, %c0_46] : memref<256x128xf32, #tpu.memory_space<vmem>>, vector<256x128xf32>
    %36 = vector.shape_cast %34 : vector<16x16x128xbf16> to vector<256x128xbf16>
    %c1_47 = arith.constant 1 : index
    %c0_48 = arith.constant 0 : index
    %c0_49 = arith.constant 0 : index
    %c0_50 = arith.constant 0 : index
    %37 = vector.load %arg2[%c1_47, %c0_48, %c0_49, %c0_50] : memref<3x3x128x128xbf16, #tpu.memory_space<vmem>>, vector<1x1x128x128xbf16>
    %38 = vector.shape_cast %37 : vector<1x1x128x128xbf16> to vector<128x128xbf16>
    %cst_51 = arith.constant dense<0.000000e+00> : vector<256x128xf32>
    %39 = tpu.matmul %36, %38, %cst_51 {dimension_numbers = #tpu.dot_dimension_numbers<[1], [0], [0], [1], [0, 0, 1, 1], [], []>} : vector<256x128xbf16>, vector<128x128xbf16>, vector<256x128xf32> -> vector<256x128xf32>
    %40 = arith.addf %35, %39 : vector<256x128xf32>
    %c0_52 = arith.constant 0 : index
    %c0_53 = arith.constant 0 : index
    %41 = vector.load %arg6[%c0_52, %c0_53] : memref<256x128xf32, #tpu.memory_space<vmem>>, vector<256x128xf32>
    tpu.vector_store %arg6[%c0_52, %c0_53], %40 {strides = array<i32>} : memref<256x128xf32, #tpu.memory_space<vmem>>, vector<256x128xf32>,
    %c1_54 = arith.constant 1 : index
    %c1_55 = arith.constant 1 : index
    %c0_56 = arith.constant 0 : index
    %42 = vector.load %arg5[%c1_54, %c1_55, %c0_56] : memref<18x18x128xf32, #tpu.memory_space<vmem>>, vector<16x16x128xf32>
    %43 = arith.truncf %42 : vector<16x16x128xf32> to vector<16x16x128xbf16>
    %c0_57 = arith.constant 0 : index
    %c0_58 = arith.constant 0 : index
    %44 = vector.load %arg6[%c0_57, %c0_58] : memref<256x128xf32, #tpu.memory_space<vmem>>, vector<256x128xf32>
    %45 = vector.shape_cast %43 : vector<16x16x128xbf16> to vector<256x128xbf16>
    %c1_59 = arith.constant 1 : index
    %c1_60 = arith.constant 1 : index
    %c0_61 = arith.constant 0 : index
    %c0_62 = arith.constant 0 : index
    %46 = vector.load %arg2[%c1_59, %c1_60, %c0_61, %c0_62] : memref<3x3x128x128xbf16, #tpu.memory_space<vmem>>, vector<1x1x128x128xbf16>
    %47 = vector.shape_cast %46 : vector<1x1x128x128xbf16> to vector<128x128xbf16>
    %cst_63 = arith.constant dense<0.000000e+00> : vector<256x128xf32>
    %48 = tpu.matmul %45, %47, %cst_63 {dimension_numbers = #tpu.dot_dimension_numbers<[1], [0], [0], [1], [0, 0, 1, 1], [], []>} : vector<256x128xbf16>, vector<128x128xbf16>, vector<256x128xf32> -> vector<256x128xf32>
    %49 = arith.addf %44, %48 : vector<256x128xf32>
    %c0_64 = arith.constant 0 : index
    %c0_65 = arith.constant 0 : index
    %50 = vector.load %arg6[%c0_64, %c0_65] : memref<256x128xf32, #tpu.memory_space<vmem>>, vector<256x128xf32>
    tpu.vector_store %arg6[%c0_64, %c0_65], %49 {strides = array<i32>} : memref<256x128xf32, #tpu.memory_space<vmem>>, vector<256x128xf32>,
    %c1_66 = arith.constant 1 : index
    %c2_67 = arith.constant 2 : index
    %c0_68 = arith.constant 0 : index
    %51 = vector.load %arg5[%c1_66, %c2_67, %c0_68] : memref<18x18x128xf32, #tpu.memory_space<vmem>>, vector<16x16x128xf32>
    %52 = arith.truncf %51 : vector<16x16x128xf32> to vector<16x16x128xbf16>
    %c0_69 = arith.constant 0 : index
    %c0_70 = arith.constant 0 : index
    %53 = vector.load %arg6[%c0_69, %c0_70] : memref<256x128xf32, #tpu.memory_space<vmem>>, vector<256x128xf32>
    %54 = vector.shape_cast %52 : vector<16x16x128xbf16> to vector<256x128xbf16>
    %c1_71 = arith.constant 1 : index
    %c2_72 = arith.constant 2 : index
    %c0_73 = arith.constant 0 : index
    %c0_74 = arith.constant 0 : index
    %55 = vector.load %arg2[%c1_71, %c2_72, %c0_73, %c0_74] : memref<3x3x128x128xbf16, #tpu.memory_space<vmem>>, vector<1x1x128x128xbf16>
    %56 = vector.shape_cast %55 : vector<1x1x128x128xbf16> to vector<128x128xbf16>
    %cst_75 = arith.constant dense<0.000000e+00> : vector<256x128xf32>
    %57 = tpu.matmul %54, %56, %cst_75 {dimension_numbers = #tpu.dot_dimension_numbers<[1], [0], [0], [1], [0, 0, 1, 1], [], []>} : vector<256x128xbf16>, vector<128x128xbf16>, vector<256x128xf32> -> vector<256x128xf32>
    %58 = arith.addf %53, %57 : vector<256x128xf32>
    %c0_76 = arith.constant 0 : index
    %c0_77 = arith.constant 0 : index
    %59 = vector.load %arg6[%c0_76, %c0_77] : memref<256x128xf32, #tpu.memory_space<vmem>>, vector<256x128xf32>
    tpu.vector_store %arg6[%c0_76, %c0_77], %58 {strides = array<i32>} : memref<256x128xf32, #tpu.memory_space<vmem>>, vector<256x128xf32>,
    %c2_78 = arith.constant 2 : index
    %c0_79 = arith.constant 0 : index
    %c0_80 = arith.constant 0 : index
    %60 = vector.load %arg5[%c2_78, %c0_79, %c0_80] : memref<18x18x128xf32, #tpu.memory_space<vmem>>, vector<16x16x128xf32>
    %61 = arith.truncf %60 : vector<16x16x128xf32> to vector<16x16x128xbf16>
    %c0_81 = arith.constant 0 : index
    %c0_82 = arith.constant 0 : index
    %62 = vector.load %arg6[%c0_81, %c0_82] : memref<256x128xf32, #tpu.memory_space<vmem>>, vector<256x128xf32>
    %63 = vector.shape_cast %61 : vector<16x16x128xbf16> to vector<256x128xbf16>
    %c2_83 = arith.constant 2 : index
    %c0_84 = arith.constant 0 : index
    %c0_85 = arith.constant 0 : index
    %c0_86 = arith.constant 0 : index
    %64 = vector.load %arg2[%c2_83, %c0_84, %c0_85, %c0_86] : memref<3x3x128x128xbf16, #tpu.memory_space<vmem>>, vector<1x1x128x128xbf16>
    %65 = vector.shape_cast %64 : vector<1x1x128x128xbf16> to vector<128x128xbf16>
    %cst_87 = arith.constant dense<0.000000e+00> : vector<256x128xf32>
    %66 = tpu.matmul %63, %65, %cst_87 {dimension_numbers = #tpu.dot_dimension_numbers<[1], [0], [0], [1], [0, 0, 1, 1], [], []>} : vector<256x128xbf16>, vector<128x128xbf16>, vector<256x128xf32> -> vector<256x128xf32>
    %67 = arith.addf %62, %66 : vector<256x128xf32>
    %c0_88 = arith.constant 0 : index
    %c0_89 = arith.constant 0 : index
    %68 = vector.load %arg6[%c0_88, %c0_89] : memref<256x128xf32, #tpu.memory_space<vmem>>, vector<256x128xf32>
    tpu.vector_store %arg6[%c0_88, %c0_89], %67 {strides = array<i32>} : memref<256x128xf32, #tpu.memory_space<vmem>>, vector<256x128xf32>,
    %c2_90 = arith.constant 2 : index
    %c1_91 = arith.constant 1 : index
    %c0_92 = arith.constant 0 : index
    %69 = vector.load %arg5[%c2_90, %c1_91, %c0_92] : memref<18x18x128xf32, #tpu.memory_space<vmem>>, vector<16x16x128xf32>
    %70 = arith.truncf %69 : vector<16x16x128xf32> to vector<16x16x128xbf16>
    %c0_93 = arith.constant 0 : index
    %c0_94 = arith.constant 0 : index
    %71 = vector.load %arg6[%c0_93, %c0_94] : memref<256x128xf32, #tpu.memory_space<vmem>>, vector<256x128xf32>
    %72 = vector.shape_cast %70 : vector<16x16x128xbf16> to vector<256x128xbf16>
    %c2_95 = arith.constant 2 : index
    %c1_96 = arith.constant 1 : index
    %c0_97 = arith.constant 0 : index
    %c0_98 = arith.constant 0 : index
    %73 = vector.load %arg2[%c2_95, %c1_96, %c0_97, %c0_98] : memref<3x3x128x128xbf16, #tpu.memory_space<vmem>>, vector<1x1x128x128xbf16>
    %74 = vector.shape_cast %73 : vector<1x1x128x128xbf16> to vector<128x128xbf16>
    %cst_99 = arith.constant dense<0.000000e+00> : vector<256x128xf32>
    %75 = tpu.matmul %72, %74, %cst_99 {dimension_numbers = #tpu.dot_dimension_numbers<[1], [0], [0], [1], [0, 0, 1, 1], [], []>} : vector<256x128xbf16>, vector<128x128xbf16>, vector<256x128xf32> -> vector<256x128xf32>
    %76 = arith.addf %71, %75 : vector<256x128xf32>
    %c0_100 = arith.constant 0 : index
    %c0_101 = arith.constant 0 : index
    %77 = vector.load %arg6[%c0_100, %c0_101] : memref<256x128xf32, #tpu.memory_space<vmem>>, vector<256x128xf32>
    tpu.vector_store %arg6[%c0_100, %c0_101], %76 {strides = array<i32>} : memref<256x128xf32, #tpu.memory_space<vmem>>, vector<256x128xf32>,
    %c2_102 = arith.constant 2 : index
    %c2_103 = arith.constant 2 : index
    %c0_104 = arith.constant 0 : index
    %78 = vector.load %arg5[%c2_102, %c2_103, %c0_104] : memref<18x18x128xf32, #tpu.memory_space<vmem>>, vector<16x16x128xf32>
    %79 = arith.truncf %78 : vector<16x16x128xf32> to vector<16x16x128xbf16>
    %c0_105 = arith.constant 0 : index
    %c0_106 = arith.constant 0 : index
    %80 = vector.load %arg6[%c0_105, %c0_106] : memref<256x128xf32, #tpu.memory_space<vmem>>, vector<256x128xf32>
    %81 = vector.shape_cast %79 : vector<16x16x128xbf16> to vector<256x128xbf16>
    %c2_107 = arith.constant 2 : index
    %c2_108 = arith.constant 2 : index
    %c0_109 = arith.constant 0 : index
    %c0_110 = arith.constant 0 : index
    %82 = vector.load %arg2[%c2_107, %c2_108, %c0_109, %c0_110] : memref<3x3x128x128xbf16, #tpu.memory_space<vmem>>, vector<1x1x128x128xbf16>
    %83 = vector.shape_cast %82 : vector<1x1x128x128xbf16> to vector<128x128xbf16>
    %cst_111 = arith.constant dense<0.000000e+00> : vector<256x128xf32>
    %84 = tpu.matmul %81, %83, %cst_111 {dimension_numbers = #tpu.dot_dimension_numbers<[1], [0], [0], [1], [0, 0, 1, 1], [], []>} : vector<256x128xbf16>, vector<128x128xbf16>, vector<256x128xf32> -> vector<256x128xf32>
    %85 = arith.addf %80, %84 : vector<256x128xf32>
    %c0_112 = arith.constant 0 : index
    %c0_113 = arith.constant 0 : index
    %86 = vector.load %arg6[%c0_112, %c0_113] : memref<256x128xf32, #tpu.memory_space<vmem>>, vector<256x128xf32>
    tpu.vector_store %arg6[%c0_112, %c0_113], %85 {strides = array<i32>} : memref<256x128xf32, #tpu.memory_space<vmem>>, vector<256x128xf32>,
    %c0_114 = arith.constant 0 : index
    %c0_115 = arith.constant 0 : index
    %87 = vector.load %arg6[%c0_114, %c0_115] : memref<256x128xf32, #tpu.memory_space<vmem>>, vector<256x128xf32>
    %88 = vector.shape_cast %87 : vector<256x128xf32> to vector<16x16x128xf32>
    %c0_116 = arith.constant 0 : index
    %c0_117 = arith.constant 0 : index
    %c0_118 = arith.constant 0 : index
    %c0_119 = arith.constant 0 : index
    %89 = vector.load %arg3[%c0_116, %c0_117, %c0_118, %c0_119] : memref<1x16x16x128xf32, #tpu.memory_space<vmem>>, vector<1x16x16x128xf32>
    %90 = vector.shape_cast %89 : vector<1x16x16x128xf32> to vector<16x16x128xf32>
    %91 = vector.shape_cast %88 : vector<16x16x128xf32> to vector<1x16x16x128xf32>
    tpu.vector_store %arg3[%c0_116, %c0_117, %c0_118, %c0_119], %91 {strides = array<i32>} : memref<1x16x16x128xf32, #tpu.memory_space<vmem>>, vector<1x16x16x128xf32>,
    %cst_120 = arith.constant dense<0.000000e+00> : vector<128xf32>
    %92 = vector.multi_reduction <add>, %87, %cst_120 [0] : vector<256x128xf32> to vector<128xf32>
    %93 = vector.shape_cast %92 : vector<128xf32> to vector<1x128xf32>
    %c0_121 = arith.constant 0 : index
    %c0_122 = arith.constant 0 : index
    %c0_123 = arith.constant 0 : index
    %94 = vector.load %arg4[%c0_121, %c0_122, %c0_123] : memref<1x2x128xf32, #tpu.memory_space<vmem>>, vector<1x1x128xf32>
    %95 = vector.shape_cast %94 : vector<1x1x128xf32> to vector<1x128xf32>
    %96 = vector.shape_cast %93 : vector<1x128xf32> to vector<1x1x128xf32>
    tpu.vector_store %arg4[%c0_121, %c0_122, %c0_123], %96 {strides = array<i32>} : memref<1x2x128xf32, #tpu.memory_space<vmem>>, vector<1x1x128xf32>,
    %97 = arith.mulf %87, %87 : vector<256x128xf32>
    %cst_124 = arith.constant dense<0.000000e+00> : vector<128xf32>
    %98 = vector.multi_reduction <add>, %97, %cst_124 [0] : vector<256x128xf32> to vector<128xf32>
    %99 = vector.shape_cast %98 : vector<128xf32> to vector<1x128xf32>
    %c0_125 = arith.constant 0 : index
    %c1_126 = arith.constant 1 : index
    %c0_127 = arith.constant 0 : index
    %100 = vector.load %arg4[%c0_125, %c1_126, %c0_127] : memref<1x2x128xf32, #tpu.memory_space<vmem>>, vector<1x1x128xf32>
    %101 = vector.shape_cast %100 : vector<1x1x128xf32> to vector<1x128xf32>
    %102 = vector.shape_cast %99 : vector<1x128xf32> to vector<1x1x128xf32>
    tpu.vector_store %arg4[%c0_125, %c1_126, %c0_127], %102 {strides = array<i32>} : memref<1x2x128xf32, #tpu.memory_space<vmem>>, vector<1x1x128xf32>,
    return
  }
  func.func @transform_0(%arg0: i32) -> (i32, i32, i32, i32) {
    %c0_i32 = arith.constant 0 : i32
    %c0_i32_0 = arith.constant 0 : i32
    %c0_i32_1 = arith.constant 0 : i32
    %c0_i32_2 = arith.constant 0 : i32
    return %arg0, %c0_i32, %c0_i32_0, %c0_i32_1 : i32, i32, i32, i32
  }
  func.func @transform_1(%arg0: i32) -> (i32, i32, i32, i32) {
    %c0_i32 = arith.constant 0 : i32
    %c0_i32_0 = arith.constant 0 : i32
    %c0_i32_1 = arith.constant 0 : i32
    %c0_i32_2 = arith.constant 0 : i32
    %c0_i32_3 = arith.constant 0 : i32
    return %c0_i32, %c0_i32_0, %c0_i32_1, %c0_i32_2 : i32, i32, i32, i32
  }
  func.func @transform_2(%arg0: i32) -> (i32, i32, i32, i32) {
    %c0_i32 = arith.constant 0 : i32
    %c0_i32_0 = arith.constant 0 : i32
    %c0_i32_1 = arith.constant 0 : i32
    %c0_i32_2 = arith.constant 0 : i32
    return %arg0, %c0_i32, %c0_i32_0, %c0_i32_1 : i32, i32, i32, i32
  }
  func.func @transform_3(%arg0: i32) -> (i32, i32, i32) {
    %c0_i32 = arith.constant 0 : i32
    %c0_i32_0 = arith.constant 0 : i32
    %c0_i32_1 = arith.constant 0 : i32
    return %arg0, %c0_i32, %c0_i32_0 : i32, i32, i32
  }
}

</mosaic_0001>

<bundles_post_ra>
// kernel: tpu_custom_call.1
= control target key start
LH: loop header
LB: loop body
LE: loop exit
PB: predicated region body
PF: predicated region fallthrough
CT: control target
= control target key end

     0   :  { %9 = vsyncpa [#allocation5], 0  ;;  %s6024_s0 = inlined_call_operand.hbm [shape: bf16[2,18,18,128], index: 0, kind: input, shape index: {}]   ;;  %s6025_s1 = inlined_call_operand.hbm [shape: bf16[3,3,128,128], index: 1, kind: input, shape index: {}]   ;;  %s6026_s2 = inlined_call_operand.hbm [shape: f32[2,16,16,128], index: 2, kind: output, shape index: {0}]   ;;  %s6027_s3 = inlined_call_operand.hbm [shape: f32[2,2,128], index: 3, kind: output, shape index: {1}]  }
   0x1   :  { %11 = vsyncpa [#allocation5 + $0x1], 0 }
   0x2   :  { %12 = vsyncpa [#allocation8], 0 }
   0x3   :  { %13 = vsyncpa [#allocation6], 0 }
   0x4   :  { %15 = vsyncpa [#allocation6 + $0x1], 0 }
   0x5   :  { %16 = vsyncpa [#allocation11], 0 }
   0x6   :  { %18 = vsyncpa [#allocation11 + $0x1], 0  ;;  %s5461_s12 = smov 0   ;;  %s5463_s13 = smov 0  }
   0x7   :  { %s5465_s14 = smov 0   ;;  %s5467_s15 = smov 0  }
   0x8 LB: > { %s5482_s16 = sadd.s32 4294967295, %s5431_s15   ;;  %s4060_s17 = sadd.s32 4294967294, %s5431_s15   ;;  %s5431_s15 = sphi %s5467_s15, %s6047_s15   ;;  %s5427_s14 = sphi %s5465_s14, %s6046_s14   ;;  %s5423_s13 = sphi %s5463_s13, %s6045_s13   ;;  %s5419_s12 = sphi %s5461_s12, %s6044_s12  }
   0x9   : > { %p44_p0 = scmp.ne.s32.totalorder %s5423_s13, %s5419_s12  ;;  %p6028_p1 = scmp.eq.s32.totalorder %s5482_s16, 0 }
   0xa   : > { %p95_p3 = scmp.eq.s32.totalorder %s4060_s17, 1  ;;  %p4061_p5 = scmp.ge.s32.totalorder %s5431_s15, 1 }
   0xb   : > { %p5491_p4 = por %p6028_p1, %p44_p0  ;;  %p128_p7 = scmp.lt.s32.totalorder %s5431_s15, 3 }
   0xc   : > { %p5496_p6 = por %p95_p3, %p44_p0  ;;  %s5433_s21 = smov [#allocation7]  }
   0xd   : > { %s6031_s18 = scalar_select %p5491_p4, 1, 0 }
   0xe   : > { %s6032_s19 = scalar_select %p5496_p6, 1, 0 }
   0xf   : > { %p5501_p8 = pnand %p4061_p5, %p128_p7  ;;  %s140_s22 = sshll.u32 %s5433_s21, 4  ;;  %s5505_s22 = int_to_ptr.vmem [resolvable:$true] %s140_s22 }
  0x10   : > { %s5517_s24 = sadd.s32 1, %s5431_s15   ;;  %s31_s25 = sadd.s32 1, %s5427_s14 }
  0x11   : > { %s6033_s20 = scalar_select %p5501_p8, 1, 0 }
  0x12   : > { %p5126_p9 = pneg %p5501_p8  ;;  %s28_s26 = ssub.s32 %s5431_s15, %s5517_s24 }
  0x13   : > { %s5271_s29 = scalar_lea.hbm %s6025_s1, 9216 }
  0x14   : > { %p5512_p11 = pnand %p5126_p9, %p6028_p1  ;;  %p5272_p12 = scmp.ne.s32.totalorder %s6025_s1, %s5271_s29 }
  0x15   : > { %p5278_p5 = scmp.lt.u32.totalorder %s5271_s29, %s6025_s1 }
  0x16   : > { %p5273_p13 = pneg %p5512_p11 }
  0x18   : > { %p5274_p0 = pnand %p5273_p13, %p5272_p12 }
  0x1a   : > { %p5275_p3 = pneg %p5274_p0 }
  0x1c   : > { %p5280_p7 = pnand %p5278_p5, %p5275_p3 }
  0x1e   : > { %5283 = shalt.err (!%p5280_p7)
}
  0x1f   : > { %s5284_s7 = scalar_lea.vmem %s5505_s22, 9216  ;;  %p5292_p2 = scmp.lt.s32.totalorder %s5505_s22, %s5505_s22 }
  0x20   : > { %p5285_p9 = scmp.ne.s32.totalorder %s5505_s22, %s5284_s7  ;;  %p5293_p6 = scmp.lt.s32.totalorder %s5284_s7, %s5284_s7 }
  0x22   : > { %p5287_p10 = pnand %p5285_p9, %p5273_p13  ;;  %p5294_p4 = por %p5293_p6, %p5292_p2 }
  0x24   : > { %p5288_p1 = pneg %p5287_p10 }
  0x26   : > { %p5295_p8 = pnand %p5294_p4, %p5288_p1 }
  0x28   : > { %5298 = shalt.err (!%p5295_p8)
}
  0x29   : > { %s5434_s8 = smov 64   ;;  %s5435_s9 = smov 4  }
  0x2a   : > { %5129 = dma.hbm_to_vmem [thread:$0]  (!%p5512_p11), %s6025_s1, 9216, %s5505_s22, [#allocation8], %s5434_s8, %s5434_s8, %s5435_s9  }
  0x2b   : > { %p29_p1 = scmp.eq.s32.totalorder %s28_s26, 0  ;;  %p38_p2 = scmp.ne.s32.totalorder %s5427_s14, %s5423_s13 }
  0x2c   : > { %p39_p4 = scmp.eq.s32.totalorder %s5431_s15, 0  ;;  %p5142_p6 = scmp.lt.s32.totalorder %s5431_s15, 2 }
  0x2d   : > { %s5551_s17 = scalar_select %p29_p1, %s5427_s14, %s31_s25  }
  0x2e   : > { %p40_p8 = por %p39_p4, %p38_p2  ;;  %p6035_p10 = scmp.eq.s32.totalorder %s5482_s16, 1 }
  0x2f   : > { %s154_s23 = sand.u32 1, %s5427_s14   ;;  %s5114_s27 = smul.u32 3456, %s5431_s15 }
  0x30   : > { %p5555_p12 = por %p6035_p10, %p38_p2  ;;  %s5113_s28 = smul.u32 216, %s154_s23 }
  0x31   : > { %p5561_p13 = pnand %p5142_p6, %p40_p8  ;;  %s5568_s25 = scalar_lea.hbm %s6024_s0, %s5114_s27 }
  0x32   : > { %s158_s30 = scalar_lea.vmem [#allocation4], %s5113_s28  ;;  %s5572_s5 = scalar_lea.sflag [#allocation5], %s154_s23 }
  0x33   : > { %s165_s4 = sshll.u32 %s158_s30, 4  ;;  %s5299_s6 = scalar_lea.hbm %s5568_s25, 3456  ;;  %s5570_s4 = int_to_ptr.vmem [resolvable:$true] %s165_s4 }
  0x34   : > { %p5300_p11 = scmp.ne.s32.totalorder %s5568_s25, %s5299_s6  ;;  %p5301_p0 = pneg %p5561_p13 }
  0x35   : > { %s5304_s11 = scalar_lea.hbm %s6024_s0, 6912  ;;  %p5305_p7 = scmp.lt.u32.totalorder %s5568_s25, %s6024_s0 }
  0x36   : > { %p5302_p3 = pnand %p5301_p0, %p5300_p11  ;;  %p5306_p9 = scmp.lt.u32.totalorder %s5304_s11, %s5299_s6 }
  0x37   : > { %p5308_p2 = scmp.lt.u32.totalorder %s5299_s6, %s5568_s25 }
  0x38   : > { %p5303_p5 = pneg %p5302_p3  ;;  %p5307_p1 = por %p5306_p9, %p5305_p7 }
  0x3a   : > { %p5309_p4 = por %p5308_p2, %p5307_p1 }
  0x3c   : > { %p5310_p6 = pnand %p5309_p4, %p5303_p5 }
  0x3e   : > { %5313 = shalt.err (!%p5310_p6)
}
  0x3f   : > { %s5314_s23 = scalar_lea.vmem %s5570_s4, 3456  ;;  %s5436_s28 = smov [#allocation4]  }
  0x40   : > { %p5315_p8 = scmp.ne.s32.totalorder %s5570_s4, %s5314_s23  ;;  %s5319_s26 = sshll.u32 %s5436_s28, 4  ;;  %s5320_s26 = int_to_ptr.vmem [resolvable:$false] %s5319_s26 }
  0x41   : > { %s5321_s30 = scalar_lea.vmem %s5320_s26, 6912  ;;  %p5322_p3 = scmp.lt.s32.totalorder %s5570_s4, %s5320_s26 }
  0x42   : > { %p5317_p10 = pnand %p5315_p8, %p5301_p0  ;;  %p5323_p7 = scmp.lt.s32.totalorder %s5321_s30, %s5314_s23 }
  0x44   : > { %p5318_p11 = pneg %p5317_p10  ;;  %p5324_p9 = por %p5323_p7, %p5322_p3 }
  0x46   : > { %p5325_p1 = pnand %p5324_p9, %p5318_p11 }
  0x48   : > { %5328 = shalt.err (!%p5325_p1)
}
  0x49   : > { %5133 = dma.hbm_to_vmem [thread:$0]  (!%p5561_p13), %s5568_s25, 3456, %s5570_s4, %s5572_s5, %s5434_s8, %s5434_s8, %s5435_s9  }
  0x4a   : > { %p6038_p0 = scmp.ne.s32.totalorder %s6033_s20, 0 }
  0x4b   : > { %s5606_s6 = sand.u32 (!%p6038_p0), 1, %s5423_s13   ;;  %p6039_p5 = scmp.ne.s32.totalorder (!%p6038_p0), %s6031_s18, 0 }
  0x4c   : > { %177 = sbr.rel (%p6038_p0) target bundleno = 663 (0x297), region = 28  ;;  %s180_s10 = scalar_lea.sflag (!%p6038_p0), [#allocation5], %s5606_s6 }
  0x4d   : > { %s5115_s7 = smul.u32 (!%p6038_p0), 216, %s5606_s6 }
  0x4f   : > { %s5610_s11 = scalar_lea.vmem (!%p6038_p0), [#allocation4], %s5115_s7 }
  0x53   : > { %5402 = dma.done.wait (%p6039_p5), %s180_s10, 3456  }
  0x54   : > { %5404 = vsyncadd (%p6039_p5), %s180_s10, 4294963840  ;;  %p6040_p13 = scmp.eq.s32.totalorder %s5482_s16, 0 }
  0x56   : > { %5406 = dma.done.wait (%p6040_p13), [#allocation8], 9216   ;;  %p6041_p2 = pmov %p6040_p13 }
  0x57   : > { %v5182_v0 = vld [vmem:[#allocation7] sm:$0xff]   ;;  %v5184_v2 = vld [vmem:[#allocation7 + $0x8] sm:$0xff]   ;;  %v5186_v4 = vld [vmem:[#allocation7 + $0x10] sm:$0xff]   ;;  %s4067_s18 = sshll.u32 %s5606_s6, 8  ;;  %s4148_s8 = sshll.u32 %s5482_s16, 12 }
  0x58   : > { %5408 = vsyncadd (%p6041_p2), [#allocation8], 4294958080  ;;  %v5183_v1 = vld [vmem:[#allocation7 + $0x100] sm:$0xff]   ;;  %4409 = vmatprep.subr.bf16.mxu1 %v5182_v0  ;;  %v5185_v3 = vld [vmem:[#allocation7 + $0x108] sm:$0xff]   ;;  %s5903_s20 = scalar_lea.vmem [#allocation9], %s4067_s18  ;;  %s5944_s4 = scalar_lea.hbm %s6026_s2, %s4148_s8 }
  0x59   : > { %4601 = vmatprep.subr.bf16.mxu0 %v5183_v1  ;;  %4410 = vmatpush3.bf16.msra.mxu1 %v5182_v0  ;;  %v5187_v5 = vld [vmem:[#allocation7 + $0x110] sm:$0xff]   ;;  %v5188_v6 = vld [vmem:[#allocation7 + $0x18] sm:$0xff]   ;;  %v5190_v8 = vld [vmem:[#allocation7 + $0x20] sm:$0xff]   ;;  %s3932_s9 = sshll.u32 %s5903_s20, 4  ;;  %s3914_s5 = scalar_lea.sflag [#allocation6], %s5606_s6  ;;  %s5946_s9 = int_to_ptr.vmem [resolvable:$true] %s3932_s9 }
  0x5a   : > { %4602 = vmatpush3.bf16.msra.mxu0 %v5183_v1  ;;  %4411 = vmatprep.subr.bf16.mxu1 %v5184_v2  ;;  %v5189_v7 = vld [vmem:[#allocation7 + $0x118] sm:$0xff]   ;;  %v5191_v9 = vld [vmem:[#allocation7 + $0x120] sm:$0xff]   ;;  %v5192_v10 = vld [vmem:[#allocation7 + $0x28] sm:$0xff]   ;;  %s5329_s27 = scalar_lea.vmem %s5946_s9, 4096  ;;  %s5437_s22 = smov [#allocation9]  }
  0x5b   : > { %4603 = vmatprep.subr.bf16.mxu0 %v5185_v3  ;;  %v5193_v11 = vld [vmem:[#allocation7 + $0x128] sm:$0xff]   ;;  %v5623_v14 = vld [vmem:[%s5610_s11 + $0xc] sm:$0xff]   ;;  %v221_v17 = vld [vmem:[%s5610_s11 + $0x14] sm:$0x1]  ;;  %p5330_p4 = scmp.ne.s32.totalorder %s5946_s9, %s5329_s27  ;;  %s5333_s23 = sshll.u32 %s5437_s22, 4  ;;  %s5334_s23 = int_to_ptr.vmem [resolvable:$false] %s5333_s23 }
  0x5c   : > { %v4150_v12 = vld [vmem:[%s5610_s11] sm:$0xff]   ;;  %v273_v18 = vunpack.c.l.bf16 %v5623_v14  ;;  %v274_v19 = vunpack.c.h.bf16 %v5623_v14  ;;  %v275_v20 = vunpack.c.l.bf16 %v221_v17  ;;  %v4185_v21 = vld [vmem:[%s5610_s11 + $0x18] sm:$0xff]   ;;  %v227_v29 = vld [vmem:[%s5610_s11 + $0x2c] sm:$0x1]  ;;  %s5335_s28 = scalar_lea.vmem %s5334_s23, 8192  ;;  %p5336_p10 = scmp.lt.s32.totalorder %s5946_s9, %s5334_s23 }
  0x5d   : > { %4412 = vmatpush3.bf16.msra.mxu1 %v5184_v2  ;;  %v5198_v13 = vld [vmem:[%s5610_s11] sm:$0xff]  ;;  %v4151_v15 = vunpack.c.l.bf16 %v4150_v12  ;;  %v4152_v16 = vunpack.c.h.bf16 %v4150_v12  ;;  %v4155_v23 = vunpack.c.l.bf16 %v4185_v21  ;;  %v4156_v24 = vunpack.c.h.bf16 %v4185_v21  ;;  %v4186_v33 = vld [vmem:[%s5610_s11 + $0x30] sm:$0xff]   ;;  %v230_v34 = vld [vmem:[%s5610_s11 + $0x38] sm:$0x1]  ;;  %p5331_p6 = pnand %p5330_p4, %p5555_p12  ;;  %p5337_p11 = scmp.lt.s32.totalorder %s5335_s28, %s5329_s27 }
  0x5e   : > { %4604 = vmatpush3.bf16.msra.mxu0 %v5185_v3  ;;  %4413 = vmatprep.subr.bf16.mxu1 %v5186_v4  ;;  %v224_v22 = vld [vmem:[%s5610_s11 + $0x20] sm:$0x1]  ;;  %327 = vst [vmem:[#allocation2 + $0x18] sm:$0xff] %v273_v18  ;;  %328 = vst [vmem:[#allocation2 + $0x20] sm:$0xff] %v274_v19  ;;  %v5631_v28 = vld [vmem:[%s5610_s11 + $0x24] sm:$0xff]   ;;  %v281_v32 = vunpack.c.l.bf16 %v227_v29  ;;  %v4159_v36 = vunpack.c.l.bf16 %v4186_v33  ;;  %v4160_v37 = vunpack.c.h.bf16 %v4186_v33  ;;  %v284_v38 = vunpack.c.l.bf16 %v230_v34 }
  0x5f   : > { %4605 = vmatprep.subr.bf16.mxu0 %v5187_v5  ;;  %4425 = vmatprep.mubr.bf16.mxu1 %v5198_v13  ;;  %324 = vst [vmem:[#allocation2] sm:$0xff] %v4151_v15  ;;  %325 = vst [vmem:[#allocation2 + $0x8] sm:$0xff] %v4152_v16  ;;  %v278_v25 = vunpack.c.l.bf16 %v224_v22  ;;  %v5194_v26 = vld [vmem:[#allocation7 + $0x30] sm:$0xff]   ;;  %v279_v30 = vunpack.c.l.bf16 %v5631_v28  ;;  %v280_v31 = vunpack.c.h.bf16 %v5631_v28  ;;  %v5196_v35 = vld [vmem:[#allocation7 + $0x38] sm:$0xff]   ;;  %p5332_p8 = pneg %p5331_p6  ;;  %p5338_p3 = por %p5337_p11, %p5336_p10 }
  0x60   : > { %329 = vst [vmem:[#allocation2 + $0x28] sm:$0x3] %v275_v20  ;;  %v5195_v27 = vld [vmem:[#allocation7 + $0x130] sm:$0xff]   ;;  %330 = vst [vmem:[#allocation2 + $0x30] sm:$0xff] %v4155_v23  ;;  %v5197_v39 = vld [vmem:[#allocation7 + $0x138] sm:$0xff]  }
  0x61   : > { %4414 = vmatpush3.bf16.msra.mxu1 %v5186_v4  ;;  %331 = vst [vmem:[#allocation2 + $0x38] sm:$0xff] %v4156_v24  ;;  %332 = vst [vmem:[#allocation2 + $0x40] sm:$0x3] %v278_v25  ;;  %v5199_v41 = vld [vmem:[#allocation7 + $0x40] sm:$0xff]   ;;  %v233_v43 = vld [vmem:[%s5610_s11 + $0x44] sm:$0x1]  ;;  %p5339_p7 = pnand %p5338_p3, %p5332_p8 }
  0x62   : > { %4606 = vmatpush3.bf16.msra.mxu0 %v5187_v5  ;;  %4415 = vmatprep.subr.bf16.mxu1 %v5188_v6  ;;  %333 = vst [vmem:[#allocation2 + $0x48] sm:$0xff] %v279_v30  ;;  %334 = vst [vmem:[#allocation2 + $0x50] sm:$0xff] %v280_v31  ;;  %v5639_v42 = vld [vmem:[%s5610_s11 + $0x3c] sm:$0xff]   ;;  %v287_v47 = vunpack.c.l.bf16 %v233_v43  ;;  %v4187_v52 = vld [vmem:[%s5610_s11 + $0x48] sm:$0xff]  }
  0x63   : > { %4607 = vmatprep.subr.bf16.mxu0 %v5189_v7  ;;  %335 = vst [vmem:[#allocation2 + $0x58] sm:$0x3] %v281_v32  ;;  %336 = vst [vmem:[#allocation2 + $0x60] sm:$0xff] %v4159_v36  ;;  %v285_v45 = vunpack.c.l.bf16 %v5639_v42  ;;  %v286_v46 = vunpack.c.h.bf16 %v5639_v42  ;;  %v5200_v51 = vld [vmem:[#allocation7 + $0x140] sm:$0xff]   ;;  %v4163_v54 = vunpack.c.l.bf16 %v4187_v52  ;;  %v4164_v55 = vunpack.c.h.bf16 %v4187_v52  ;;  %v5201_v62 = vld [vmem:[#allocation7 + $0x148] sm:$0xff]  }
  0x64   : > { %337 = vst [vmem:[#allocation2 + $0x68] sm:$0xff] %v4160_v37  ;;  %338 = vst [vmem:[#allocation2 + $0x70] sm:$0x3] %v284_v38  ;;  %v236_v53 = vld [vmem:[%s5610_s11 + $0x50] sm:$0x1]  ;;  %v5652_v60 = vld [vmem:[%s5610_s11 + $0x18] sm:$0xff] }
  0x65   : > { %4416 = vmatpush3.bf16.msra.mxu1 %v5188_v6  ;;  %v1890_v40 = vld [vmem:[#allocation2 + $0x19] sm:$0xff]  ;;  %339 = vst [vmem:[#allocation2 + $0x78] sm:$0xff] %v285_v45  ;;  %340 = vst [vmem:[#allocation2 + $0x80] sm:$0xff] %v286_v46  ;;  %v290_v56 = vunpack.c.l.bf16 %v236_v53  ;;  %v5203_v0 = vld [vmem:[#allocation7 + $0x48] sm:$0xff]  }
  0x66   : > { %4608 = vmatpush3.bf16.msra.mxu0 %v5189_v7  ;;  %4417 = vmatprep.subr.bf16.mxu1 %v5190_v8  ;;  %341 = vst [vmem:[#allocation2 + $0x88] sm:$0x3] %v287_v47  ;;  %342 = vst [vmem:[#allocation2 + $0x90] sm:$0xff] %v4163_v54  ;;  %v5655_v61 = vld [vmem:[%s5610_s11 + $0x54] sm:$0xff]   ;;  %v239_v1 = vld [vmem:[%s5610_s11 + $0x5c] sm:$0x1] }
  0x67   : > { %4609 = vmatprep.subr.bf16.mxu0 %v5191_v9  ;;  %v1891_v44 = vld [vmem:[#allocation2 + $0x21] sm:$0xff]  ;;  %343 = vst [vmem:[#allocation2 + $0x98] sm:$0xff] %v4164_v55  ;;  %344 = vst [vmem:[#allocation2 + $0xa0] sm:$0x3] %v290_v56  ;;  %v291_v2 = vunpack.c.l.bf16 %v5655_v61  ;;  %v292_v3 = vunpack.c.h.bf16 %v5655_v61  ;;  %v5207_v5 = vld [vmem:[#allocation7 + $0x50] sm:$0xff]   ;;  %v293_v6 = vunpack.c.l.bf16 %v239_v1 }
  0x68   : > { %v5644_v48 = vpack.c.bf16 %v1891_v44, %v1890_v40  ;;  %v1892_v49 = vld [vmem:[#allocation2 + $0x31] sm:$0xff]  ;;  %v1893_v50 = vld [vmem:[#allocation2 + $0x39] sm:$0xff]  ;;  %v5218_v43 = vld [vmem:[#allocation7 + $0x68] sm:$0xff]  }
  0x69   : > { %4418 = vmatpush3.bf16.msra.mxu1 %v5190_v8  ;;  %v5649_v57 = vpack.c.bf16 %v1893_v50, %v1892_v49  ;;  %v1894_v58 = vld [vmem:[#allocation2 + $0x49] sm:$0xff]  ;;  %345 = vst [vmem:[#allocation2 + $0xa8] sm:$0xff] %v291_v2  ;;  %346 = vst [vmem:[#allocation2 + $0xb0] sm:$0xff] %v292_v3  ;;  %v5671_v17 = vld [vmem:[%s5610_s11 + $0x30] sm:$0xff] }
  0x6a   : > { %4610 = vmatpush3.bf16.msra.mxu0 %v5191_v9  ;;  %4419 = vmatprep.subr.bf16.mxu1 %v5192_v10  ;;  %v1895_v59 = vld [vmem:[#allocation2 + $0x51] sm:$0xff]  ;;  %347 = vst [vmem:[#allocation2 + $0xb8] sm:$0x3] %v293_v6  ;;  %v4189_v24 = vld [vmem:[%s5610_s11 + $0x78] sm:$0xff]  }
  0x6b   : > { %4611 = vmatprep.subr.bf16.mxu0 %v5193_v11  ;;  %4617 = vmatprep.mubr.bf16.mxu0 %v5644_v48  ;;  %v5657_v63 = vpack.c.bf16 %v1895_v59, %v1894_v58  ;;  %v1896_v4 = vld [vmem:[#allocation2 + $0x61] sm:$0xff]  ;;  %v5204_v7 = vld [vmem:[#allocation7 + $0x150] sm:$0xff]   ;;  %v5205_v20 = vld [vmem:[#allocation7 + $0x158] sm:$0xff]   ;;  %v4171_v29 = vunpack.c.l.bf16 %v4189_v24  ;;  %v4172_v30 = vunpack.c.h.bf16 %v4189_v24 }
  0x6c   : > { %v4188_v8 = vld [vmem:[%s5610_s11 + $0x60] sm:$0xff]   ;;  %v242_v9 = vld [vmem:[%s5610_s11 + $0x68] sm:$0x1]  ;;  %v5676_v19 = vld [vmem:[%s5610_s11 + $0x6c] sm:$0xff]  }
  0x6d   : > { %4420 = vmatpush3.bf16.msra.mxu1 %v5192_v10  ;;  %v1897_v10 = vld [vmem:[#allocation2 + $0x69] sm:$0xff]  ;;  %v4167_v12 = vunpack.c.l.bf16 %v4188_v8  ;;  %v4168_v13 = vunpack.c.h.bf16 %v4188_v8  ;;  %v1899_v15 = vld [vmem:[#allocation2 + $0x81] sm:$0xff]  ;;  %v297_v21 = vunpack.c.l.bf16 %v5676_v19  ;;  %v298_v22 = vunpack.c.h.bf16 %v5676_v19  ;;  %v5211_v23 = vld [vmem:[#allocation7 + $0x58] sm:$0xff]   ;;  %354 = vst [vmem:[#allocation2 + $0xf0] sm:$0xff] %v4171_v29 }
  0x6e   : > { %4612 = vmatpush3.bf16.msra.mxu0 %v5193_v11  ;;  %4421 = vmatprep.subr.bf16.mxu1 %v5194_v26  ;;  %v1898_v11 = vld [vmem:[#allocation2 + $0x79] sm:$0xff]  ;;  %v5668_v16 = vpack.c.bf16 %v1897_v10, %v1896_v4  ;;  %v1900_v25 = vld [vmem:[#allocation2 + $0x91] sm:$0xff]  ;;  %355 = vst [vmem:[#allocation2 + $0xf8] sm:$0xff] %v4172_v30  ;;  %v2261_v54 = vld [vmem:[#allocation2 + $0x22] sm:$0xff] }
  0x6f   : > { %4613 = vmatprep.subr.bf16.mxu0 %v5195_v27  ;;  %348 = vst [vmem:[#allocation2 + $0xc0] sm:$0xff] %v4167_v12  ;;  %349 = vst [vmem:[#allocation2 + $0xc8] sm:$0xff] %v4168_v13  ;;  %v5673_v18 = vpack.c.bf16 %v1899_v15, %v1898_v11  ;;  %v5686_v33 = vld [vmem:[%s5610_s11 + $0x84] sm:$0xff]   ;;  %v5215_v34 = vld [vmem:[#allocation7 + $0x60] sm:$0xff]  }
  0x70   : > { %351 = vst [vmem:[#allocation2 + $0xd8] sm:$0xff] %v297_v21  ;;  %352 = vst [vmem:[#allocation2 + $0xe0] sm:$0xff] %v298_v22  ;;  %v1902_v31 = vld [vmem:[#allocation2 + $0xa9] sm:$0xff]  ;;  %v304_v36 = vunpack.c.h.bf16 %v5686_v33  ;;  %v4190_v40 = vld [vmem:[%s5610_s11 + $0x90] sm:$0xff]  }
  0x71   : > { %4422 = vmatpush3.bf16.msra.mxu1 %v5194_v26  ;;  %v1901_v26 = vld [vmem:[#allocation2 + $0x99] sm:$0xff]  ;;  %v1903_v32 = vld [vmem:[#allocation2 + $0xb1] sm:$0xff]  ;;  %v4175_v44 = vunpack.c.l.bf16 %v4190_v40  ;;  %v4176_v45 = vunpack.c.h.bf16 %v4190_v40  ;;  %v248_v13 = vld [vmem:[%s5610_s11 + $0x80] sm:$0x1] }
  0x72   : > { %4614 = vmatpush3.bf16.msra.mxu0 %v5195_v27  ;;  %4423 = vmatprep.subr.bf16.mxu1 %v5196_v35  ;;  %v5208_v27 = vld [vmem:[#allocation7 + $0x160] sm:$0xff]   ;;  %v5690_v37 = vpack.c.bf16 %v1901_v26, %v1900_v25  ;;  %v5693_v38 = vld [vmem:[%s5610_s11 + $0x48] sm:$0xff]  ;;  %358 = vst [vmem:[#allocation2 + $0x110] sm:$0xff] %v304_v36  ;;  %v5714_v1 = vld [vmem:[%s5610_s11 + $0x60] sm:$0xff]  ;;  %v302_v15 = vunpack.c.l.bf16 %v248_v13 }
  0x73   : > { %4615 = vmatprep.subr.bf16.mxu0 %v5197_v39  ;;  %v5700_v46 = vld [vmem:[%s5610_s11 + $0x9c] sm:$0xff]   ;;  %360 = vst [vmem:[#allocation2 + $0x120] sm:$0xff] %v4175_v44  ;;  %361 = vst [vmem:[#allocation2 + $0x128] sm:$0xff] %v4176_v45  ;;  %v2260_v53 = vld [vmem:[#allocation2 + $0x1a] sm:$0xff] }
  0x74   : > { %v5212_v49 = vld [vmem:[#allocation7 + $0x170] sm:$0xff]   ;;  %v309_v50 = vunpack.c.l.bf16 %v5700_v46  ;;  %v5718_v4 = vpack.c.bf16 %v2261_v54, %v2260_v53  ;;  %v5224_v8 = vld [vmem:[#allocation7 + $0x78] sm:$0xff]   ;;  %356 = vst [vmem:[#allocation2 + $0x100] sm:$0x3] %v302_v15  ;;  %v5733_v26 = vld [vmem:[%s5610_s11 + $0x78] sm:$0xff] }
  0x75   : > { %4424 = vmatpush3.bf16.msra.mxu1 %v5196_v35  ;;  %v303_v35 = vunpack.c.l.bf16 %v5686_v33  ;;  %v4191_v55 = vld [vmem:[%s5610_s11 + $0xa8] sm:$0xff]   ;;  %v245_v10 = vld [vmem:[%s5610_s11 + $0x74] sm:$0x1]  ;;  %v263_v44 = vld [vmem:[%s5610_s11 + $0xbc] sm:$0x1] }
  0x76   : > { %4616 = vmatpush3.bf16.msra.mxu0 %v5197_v39  ;;  %4457 = vmatprep.subr.bf16.mxu1 %v5199_v41  ;;  %v5695_v39 = vpack.c.bf16 %v1903_v32, %v1902_v31  ;;  %v1904_v47 = vld [vmem:[#allocation2 + $0xc1] sm:$0xff]  ;;  %363 = vst [vmem:[#allocation2 + $0x138] sm:$0xff] %v309_v50  ;;  %v5221_v56 = vld [vmem:[#allocation7 + $0x70] sm:$0xff]   ;;  %v4179_v58 = vunpack.c.l.bf16 %v4191_v55  ;;  %v4180_v59 = vunpack.c.h.bf16 %v4191_v55  ;;  %v299_v12 = vunpack.c.l.bf16 %v245_v10 }
  0x77   : > { %4649 = vmatprep.subr.bf16.mxu0 %v5200_v51  ;;  %357 = vst [vmem:[#allocation2 + $0x108] sm:$0xff] %v303_v35  ;;  %v218_v6 = vld [vmem:[%s5610_s11 + $0x8] sm:$0x1]  ;;  %v2263_v11 = vld [vmem:[#allocation2 + $0x3a] sm:$0xff]  ;;  %v257_v31 = vld [vmem:[%s5610_s11 + $0xa4] sm:$0x1] }
  0x78   : > { %4426 = vmatmul.mubr.bf16.vlgmr.msra.gmra.mrb[0].mxu1 %v5623_v14  ;;  %v296_v14 = vunpack.c.l.bf16 %v242_v9  ;;  %366 = vst [vmem:[#allocation2 + $0x150] sm:$0xff] %v4179_v58  ;;  %367 = vst [vmem:[#allocation2 + $0x158] sm:$0xff] %v4180_v59  ;;  %v272_v9 = vunpack.c.l.bf16 %v218_v6  ;;  %v2265_v21 = vld [vmem:[#allocation2 + $0x52] sm:$0xff]  ;;  %v5219_v32 = vld [vmem:[#allocation7 + $0x188] sm:$0xff]  }
  0x79   : > { %4618 = vmatmul.mubr.bf16.vlgmr.msra.gmra.mrb[0].mxu0 %v5649_v57  ;;  %4458 = vmatpush3.bf16.msra.mxu1 %v5199_v41  ;;  %v5209_v41 = vld [vmem:[#allocation7 + $0x168] sm:$0xff]   ;;  %353 = vst [vmem:[#allocation2 + $0xe8] sm:$0x3] %v299_v12  ;;  %v251_v22 = vld [vmem:[%s5610_s11 + $0x8c] sm:$0x1] }
  0x7a   : > { %4650 = vmatpush3.bf16.msra.mxu0 %v5200_v51  ;;  %4429 = vmatprep.mubr.bf16.mxu1 %v5652_v60  ;;  %350 = vst [vmem:[#allocation2 + $0xd0] sm:$0x3] %v296_v14  ;;  %v310_v51 = vunpack.c.h.bf16 %v5700_v46  ;;  %v5216_v14 = vld [vmem:[#allocation7 + $0x180] sm:$0xff]   ;;  %326 = vst [vmem:[#allocation2 + $0x10] sm:$0x3] %v272_v9  ;;  %v305_v24 = vunpack.c.l.bf16 %v251_v22  ;;  %v4192_v50 = vld [vmem:[%s5610_s11 + $0xc0] sm:$0xff]  }
  0x7b   : > { %4651 = vmatprep.subr.bf16.mxu0 %v5201_v62  ;;  %4621 = vmatprep.mubr.bf16.mxu0 %v5657_v63  ;;  %v260_v35 = vld [vmem:[%s5610_s11 + $0xb0] sm:$0x1]  ;;  %v2266_v36 = vld [vmem:[#allocation2 + $0x62] sm:$0xff]  ;;  %v4183_v53 = vunpack.c.l.bf16 %v4192_v50  ;;  %v4184_v54 = vunpack.c.h.bf16 %v4192_v50  ;;  %v266_v55 = vld [vmem:[%s5610_s11 + $0xc8] sm:$0x1] }
  0x7c   : > { %4459 = vmatprep.subr.bf16.mxu1 %v5203_v0  ;;  %364 = vst [vmem:[#allocation2 + $0x140] sm:$0xff] %v310_v51  ;;  %359 = vst [vmem:[#allocation2 + $0x118] sm:$0x3] %v305_v24  ;;  %v314_v40 = vunpack.c.l.bf16 %v260_v35  ;;  %v2269_v45 = vld [vmem:[#allocation2 + $0x82] sm:$0xff]  ;;  %v320_v58 = vunpack.c.l.bf16 %v266_v55  ;;  %v5225_v59 = vld [vmem:[#allocation7 + $0x198] sm:$0xff]  }
  0x7d   : > { %4460 = vmatpush3.bf16.msra.mxu1 %v5203_v0  ;;  %372 = vst [vmem:[#allocation2 + $0x180] sm:$0xff] %v4183_v53  ;;  %373 = vst [vmem:[#allocation2 + $0x188] sm:$0xff] %v4184_v54  ;;  %v2273_v6 = vld [vmem:[#allocation2 + $0xb2] sm:$0xff]  ;;  %v2274_v12 = vld [vmem:[#allocation2 + $0xc2] sm:$0xff] }
  0x7e   : > { %4652 = vmatpush3.bf16.msra.mxu0 %v5201_v62  ;;  %4461 = vmatprep.subr.bf16.mxu1 %v5207_v5  ;;  %v5709_v62 = vld [vmem:[%s5610_s11 + $0xb4] sm:$0xff]   ;;  %368 = vst [vmem:[#allocation2 + $0x160] sm:$0x3] %v314_v40  ;;  %374 = vst [vmem:[#allocation2 + $0x190] sm:$0x3] %v320_v58  ;;  %v5762_v9 = vld [vmem:[%s5610_s11 + $0xa8] sm:$0xff] }
  0x7f   : > { %4653 = vmatprep.subr.bf16.mxu0 %v5204_v7  ;;  %v315_v2 = vunpack.c.l.bf16 %v5709_v62  ;;  %v316_v3 = vunpack.c.h.bf16 %v5709_v62  ;;  %v5231_v22 = vld [vmem:[#allocation7 + $0x1b0] sm:$0xff]   ;;  %v5777_v40 = vld [vmem:[#allocation7 + $0x1c0] sm:$0xff]  }
  0x80   : > { %4430 = vmatmul.mubr.bf16.gmra.mrb[4].mxu1 %v5631_v28  ;;  %v2280_v35 = vld [vmem:[#allocation2 + $0x10a] sm:$0xff]  ;;  %v2282_v50 = vld [vmem:[#allocation2 + $0x122] sm:$0xff] }
  0x81   : > { %4622 = vmatmul.mubr.bf16.gmra.mrb[4].mxu0 %v5668_v16  ;;  %4433 = vmatprep.mubr.bf16.mxu1 %v5671_v17  ;;  %v1905_v52 = vld [vmem:[#allocation2 + $0xc9] sm:$0xff]  ;;  %369 = vst [vmem:[#allocation2 + $0x168] sm:$0xff] %v315_v2  ;;  %370 = vst [vmem:[#allocation2 + $0x170] sm:$0xff] %v316_v3  ;;  %v2270_v2 = vld [vmem:[#allocation2 + $0x92] sm:$0xff] }
  0x82   : > { %4654 = vmatpush3.bf16.msra.mxu0 %v5204_v7  ;;  %4625 = vmatprep.mubr.bf16.mxu0 %v5673_v18  ;;  %v5711_v0 = vpack.c.bf16 %v1905_v52, %v1904_v47  ;;  %v2262_v7 = vld [vmem:[#allocation2 + $0x32] sm:$0xff]  ;;  %v2271_v3 = vld [vmem:[#allocation2 + $0x9a] sm:$0xff]  ;;  %v2275_v13 = vld [vmem:[#allocation2 + $0xca] sm:$0xff] }
  0x83   : > { %4655 = vmatprep.subr.bf16.mxu0 %v5205_v20  ;;  %4462 = vmatpush3.bf16.msra.mxu1 %v5207_v5  ;;  %v5213_v5 = vld [vmem:[#allocation7 + $0x178] sm:$0xff]   ;;  %v5730_v25 = vpack.c.bf16 %v2263_v11, %v2262_v7  ;;  %v5222_v47 = vld [vmem:[#allocation7 + $0x190] sm:$0xff]   ;;  %v5227_v7 = vld [vmem:[#allocation7 + $0x1a0] sm:$0xff]   ;;  %v5770_v24 = vpack.c.bf16 %v2275_v13, %v2274_v12 }
  0x84   : > { %4463 = vmatprep.subr.bf16.mxu1 %v5211_v23  ;;  %v5750_v52 = vld [vmem:[%s5610_s11 + $0x90] sm:$0xff]  ;;  %v5229_v11 = vld [vmem:[#allocation7 + $0x1a8] sm:$0xff]   ;;  %v5230_v54 = vld [vmem:[#allocation7 + $0x90] sm:$0xff]  }
  0x85   : > { %v780_v15 = vld [vmem:[#allocation2 + $0x9] sm:$0xff]  ;;  %v2284_v55 = vld [vmem:[#allocation2 + $0x13a] sm:$0xff] }
  0x86   : > { %4656 = vmatpush3.bf16.msra.mxu0 %v5205_v20  ;;  %v2264_v20 = vld [vmem:[#allocation2 + $0x4a] sm:$0xff] }
  0x87   : > { %4657 = vmatprep.subr.bf16.mxu0 %v5208_v27  ;;  %4464 = vmatpush3.bf16.msra.mxu1 %v5211_v23  ;;  %v5728_v23 = vld [vmem:[#allocation7 + $0x80] sm:$0xff]   ;;  %v5736_v29 = vpack.c.bf16 %v2265_v21, %v2264_v20  ;;  %v2291_v12 = vld [vmem:[#allocation2 + $0x18a] sm:$0xff] }
  0x88   : > { %4434 = vmatmul.mubr.bf16.gmra.mrb[8].mxu1 %v5639_v42  ;;  %4465 = vmatprep.subr.bf16.mxu1 %v5215_v34  ;;  %v2276_v20 = vld [vmem:[#allocation2 + $0xda] sm:$0xff]  ;;  %v2277_v21 = vld [vmem:[#allocation2 + $0xe2] sm:$0xff]  ;;  %v5238_v13 = vld [vmem:[#allocation7 + $0xb0] sm:$0xff]  }
  0x89   : > { %4626 = vmatmul.mubr.bf16.gmra.mrb[8].mxu0 %v5690_v37  ;;  %4437 = vmatprep.mubr.bf16.mxu1 %v5693_v38 }
  0x8a   : > { %4658 = vmatpush3.bf16.msra.mxu0 %v5208_v27  ;;  %4629 = vmatprep.mubr.bf16.mxu0 %v5695_v39  ;;  %v254_v27 = vld [vmem:[%s5610_s11 + $0x98] sm:$0x1] }
  0x8b   : > { %4659 = vmatprep.subr.bf16.mxu0 %v5209_v41  ;;  %4466 = vmatpush3.bf16.msra.mxu1 %v5215_v34  ;;  %v308_v30 = vunpack.c.l.bf16 %v254_v27  ;;  %v311_v34 = vunpack.c.l.bf16 %v257_v31  ;;  %v5233_v31 = vld [vmem:[#allocation7 + $0x1b8] sm:$0xff]  }
  0x8c   : > { %4467 = vmatprep.subr.bf16.mxu1 %v5218_v43 }
  0x8d   : > { %362 = vst [vmem:[#allocation2 + $0x130] sm:$0x3] %v308_v30  ;;  %365 = vst [vmem:[#allocation2 + $0x148] sm:$0x3] %v311_v34  ;;  %v5772_v30 = vpack.c.bf16 %v2277_v21, %v2276_v20  ;;  %v2279_v34 = vld [vmem:[#allocation2 + $0xfa] sm:$0xff] }
  0x8e   : > { %4660 = vmatpush3.bf16.msra.mxu0 %v5209_v41  ;;  %v2267_v41 = vld [vmem:[#allocation2 + $0x6a] sm:$0xff]  ;;  %v5240_v21 = vld [vmem:[#allocation7 + $0xb8] sm:$0xff]  }
  0x8f   : > { %4661 = vmatprep.subr.bf16.mxu0 %v5212_v49  ;;  %4468 = vmatpush3.bf16.msra.mxu1 %v5218_v43  ;;  %v2268_v43 = vld [vmem:[#allocation2 + $0x7a] sm:$0xff]  ;;  %v5747_v51 = vpack.c.bf16 %v2267_v41, %v2266_v36  ;;  %v2281_v36 = vld [vmem:[#allocation2 + $0x112] sm:$0xff] }
  0x90   : > { %4438 = vmatmul.mubr.bf16.gmra.mrb[12].mxu1 %v5655_v61  ;;  %4469 = vmatprep.subr.bf16.mxu1 %v5221_v56 }
  0x91   : > { %4630 = vmatmul.mubr.bf16.gmra.mrb[12].mxu0 %v5711_v0  ;;  %4441 = vmatprep.mubr.bf16.mxu1 %v5714_v1 }
  0x92   : > { %4662 = vmatpush3.bf16.msra.mxu0 %v5212_v49  ;;  %4665 = vmatprep.mubr.bf16.mxu0 %v5718_v4  ;;  %v317_v49 = vunpack.c.l.bf16 %v263_v44  ;;  %v5784_v44 = vpack.c.bf16 %v2281_v36, %v2280_v35  ;;  %v5237_v35 = vld [vmem:[#allocation7 + $0x1c8] sm:$0xff]  }
  0x93   : > { %4663 = vmatprep.subr.bf16.mxu0 %v5213_v5  ;;  %4470 = vmatpush3.bf16.msra.mxu1 %v5221_v56  ;;  %v5753_v56 = vpack.c.bf16 %v2269_v45, %v2268_v43  ;;  %v5782_v43 = vld [vmem:[%s5610_s11 + $0xcc] sm:$0xff]  }
  0x94   : > { %4471 = vmatprep.subr.bf16.mxu1 %v5224_v8  ;;  %371 = vst [vmem:[#allocation2 + $0x178] sm:$0x3] %v317_v49  ;;  %v321_v45 = vunpack.c.l.bf16 %v5782_v43  ;;  %v5228_v49 = vld [vmem:[#allocation7 + $0x88] sm:$0xff]  }
  0x95   : > { %v2283_v53 = vld [vmem:[#allocation2 + $0x12a] sm:$0xff]  ;;  %v2285_v58 = vld [vmem:[#allocation2 + $0x142] sm:$0xff] }
  0x96   : > { %4664 = vmatpush3.bf16.msra.mxu0 %v5213_v5  ;;  %v2272_v5 = vld [vmem:[#allocation2 + $0xaa] sm:$0xff]  ;;  %375 = vst [vmem:[#allocation2 + $0x198] sm:$0xff] %v321_v45 }
  0x97   : > { %4697 = vmatprep.subr.bf16.mxu0 %v5216_v14  ;;  %4472 = vmatpush3.bf16.msra.mxu1 %v5224_v8  ;;  %v5759_v8 = vpack.c.bf16 %v2271_v3, %v2270_v2  ;;  %v5764_v10 = vpack.c.bf16 %v2273_v6, %v2272_v5  ;;  %v5232_v2 = vld [vmem:[#allocation7 + $0x98] sm:$0xff]   ;;  %v2288_v3 = vld [vmem:[#allocation2 + $0x16a] sm:$0xff]  ;;  %v5234_v6 = vld [vmem:[#allocation7 + $0xa0] sm:$0xff]  }
  0x98   : > { %4442 = vmatmul.mubr.bf16.gmra.mrb[16].mxu1 %v5676_v19  ;;  %4505 = vmatprep.subr.bf16.mxu1 %v5728_v23  ;;  %v804_v36 = vld [vmem:[#allocation2 + $0x129] sm:$0xff] }
  0x99   : > { %4666 = vmatmul.mubr.bf16.vlgmr.msra.gmra.mrb[0].mxu0 %v5730_v25  ;;  %4445 = vmatprep.mubr.bf16.mxu1 %v5733_v26  ;;  %v5239_v45 = vld [vmem:[#allocation7 + $0x1d0] sm:$0xff]  }
  0x9a   : > { %4698 = vmatpush3.bf16.msra.mxu0 %v5216_v14  ;;  %4669 = vmatprep.mubr.bf16.mxu0 %v5736_v29  ;;  %v779_v14 = vld [vmem:[#allocation2 + $0x1] sm:$0xff] }
  0x9b   : > { %4699 = vmatprep.subr.bf16.mxu0 %v5219_v32  ;;  %v811_v27 = vpack.c.bf16 %v780_v15, %v779_v14  ;;  %v2289_v5 = vld [vmem:[#allocation2 + $0x172] sm:$0xff]  ;;  %v269_v14 = vld [vmem:[%s5610_s11 + $0xd4] sm:$0x1] }
  0x9c   : > { %v323_v20 = vunpack.c.l.bf16 %v269_v14  ;;  %v5254_v14 = vld [vmem:[#allocation7 + $0x208] sm:$0xff]  }
  0x9e   : > { %4700 = vmatpush3.bf16.msra.mxu0 %v5219_v32  ;;  %v2278_v32 = vld [vmem:[#allocation2 + $0xf2] sm:$0xff]  ;;  %377 = vst [vmem:[#allocation2 + $0x1a8] sm:$0x3] %v323_v20 }
  0x9f   : > { %4701 = vmatprep.subr.bf16.mxu0 %v5222_v47  ;;  %v5779_v41 = vpack.c.bf16 %v2279_v34, %v2278_v32  ;;  %v3010_v20 = vld [vmem:[#allocation2 + $0x99] sm:$0xff] }
  0xa0   : > { %4446 = vmatmul.mubr.bf16.gmra.mrb[20].mxu1 %v5686_v33 }
  0xa1   : > { %4670 = vmatmul.mubr.bf16.gmra.mrb[4].mxu0 %v5747_v51  ;;  %4449 = vmatprep.mubr.bf16.mxu1 %v5750_v52 }
  0xa2   : > { %4673 = vmatprep.mubr.bf16.mxu0 %v5753_v56  ;;  %4702 = vmatpush3.bf16.msra.mxu0 %v5222_v47  ;;  %v322_v47 = vunpack.c.h.bf16 %v5782_v43 }
  0xa3   : > { %4703 = vmatprep.subr.bf16.mxu0 %v5225_v59 }
  0xa4   : > { %376 = vst [vmem:[#allocation2 + $0x1a0] sm:$0xff] %v322_v47 }
  0xa6   : > { %4704 = vmatpush3.bf16.msra.mxu0 %v5225_v59  ;;  %v5794_v59 = vpack.c.bf16 %v2283_v53, %v2282_v50  ;;  %v5241_v50 = vld [vmem:[#allocation7 + $0x1d8] sm:$0xff]  }
  0xa7   : > { %4705 = vmatprep.subr.bf16.mxu0 %v5227_v7  ;;  %v808_v53 = vld [vmem:[#allocation2 + $0x159] sm:$0xff] }
  0xa8   : > { %4450 = vmatmul.mubr.bf16.gmra.mrb[24].mxu1 %v5700_v46 }
  0xa9   : > { %4674 = vmatmul.mubr.bf16.gmra.mrb[8].mxu0 %v5759_v8  ;;  %4453 = vmatprep.mubr.bf16.mxu1 %v5762_v9 }
  0xaa   : > { %4677 = vmatprep.mubr.bf16.mxu0 %v5764_v10  ;;  %4706 = vmatpush3.bf16.msra.mxu0 %v5227_v7 }
  0xab   : > { %4707 = vmatprep.subr.bf16.mxu0 %v5229_v11 }
  0xae   : > { %4708 = vmatpush3.bf16.msra.mxu0 %v5229_v11  ;;  %v5804_v11 = vpack.c.bf16 %v2289_v5, %v2288_v3  ;;  %v5247_v3 = vld [vmem:[#allocation7 + $0x1f0] sm:$0xff]  }
  0xaf   : > { %4709 = vmatprep.subr.bf16.mxu0 %v5231_v22 }
  0xb0   : > { %4454 = vmatmul.mubr.bf16.gmra.mrb[28].mxu1 %v5709_v62 }
  0xb1   : > { %4678 = vmatmul.mubr.bf16.gmra.mrb[12].mxu0 %v5770_v24  ;;  %4473 = vmatprep.mubr.bf16.mxu1 %v811_v27  ;;  %v800_v27 = vld [vmem:[#allocation2 + $0xf9] sm:$0xff] }
  0xb2   : > { %4681 = vmatprep.mubr.bf16.mxu0 %v5772_v30  ;;  %4710 = vmatpush3.bf16.msra.mxu0 %v5231_v22  ;;  %v799_v22 = vld [vmem:[#allocation2 + $0xf1] sm:$0xff] }
  0xb3   : > { %4711 = vmatprep.subr.bf16.mxu0 %v5233_v31  ;;  %v5818_v34 = vpack.c.bf16 %v800_v27, %v799_v22  ;;  %v5258_v22 = vld [vmem:[#allocation7 + $0x218] sm:$0xff]   ;;  %v3013_v27 = vld [vmem:[#allocation2 + $0xc1] sm:$0xff] }
  0xb6   : > { %4712 = vmatpush3.bf16.msra.mxu0 %v5233_v31  ;;  %v5814_v31 = vld [vmem:[#allocation7 + $0xc0] sm:$0xff]  }
  0xb7   : > { %4745 = vmatprep.subr.bf16.mxu0 %v5777_v40 }
  0xb8   : > { %4474 = vmatmul.mubr.bf16.vlgmr.msra.gmra.mrb[0].mxu1 %v5644_v48  ;;  %v5796_v48 = vpack.c.bf16 %v2285_v58, %v2284_v55 }
  0xb9   : > { %4682 = vmatmul.mubr.bf16.gmra.mrb[16].mxu0 %v5779_v41  ;;  %4506 = vmatpush3.bf16.msra.mxu1 %v5728_v23  ;;  %v2287_v23 = vld [vmem:[#allocation2 + $0x15a] sm:$0xff] }
  0xba   : > { %4477 = vmatprep.mubr.bf16.mxu1 %v5649_v57  ;;  %4685 = vmatprep.mubr.bf16.mxu0 %v5784_v44  ;;  %v2286_v57 = vld [vmem:[#allocation2 + $0x152] sm:$0xff] }
  0xbb   : > { %4507 = vmatprep.subr.bf16.mxu1 %v5228_v49  ;;  %v5802_v7 = vpack.c.bf16 %v2287_v23, %v2286_v57  ;;  %v1149_v57 = vld [vmem:[#allocation2 + $0x2] sm:$0xff]  ;;  %v1150_v23 = vld [vmem:[#allocation2 + $0xa] sm:$0xff] }
  0xbd   : > { %4508 = vmatpush3.bf16.msra.mxu1 %v5228_v49 }
  0xbe   : > { %4509 = vmatprep.subr.bf16.mxu1 %v5230_v54 }
  0xc0   : > { %4478 = vmatmul.mubr.bf16.gmra.mrb[4].mxu1 %v5657_v63  ;;  %v5236_v63 = vld [vmem:[#allocation7 + $0xa8] sm:$0xff]  }
  0xc1   : > { %4686 = vmatmul.mubr.bf16.gmra.mrb[20].mxu0 %v5794_v59  ;;  %4481 = vmatprep.mubr.bf16.mxu1 %v5668_v16  ;;  %v2290_v16 = vld [vmem:[#allocation2 + $0x182] sm:$0xff] }
  0xc2   : > { %4689 = vmatprep.mubr.bf16.mxu0 %v5796_v48  ;;  %4510 = vmatpush3.bf16.msra.mxu1 %v5230_v54  ;;  %v2307_v15 = vpack.c.bf16 %v2291_v12, %v2290_v16  ;;  %v5243_v54 = vld [vmem:[#allocation7 + $0x1e0] sm:$0xff]   ;;  %v3006_v16 = vld [vmem:[#allocation2 + $0x69] sm:$0xff] }
  0xc3   : > { %4511 = vmatprep.subr.bf16.mxu1 %v5232_v2 }
  0xc6   : > { %4512 = vmatpush3.bf16.msra.mxu1 %v5232_v2  ;;  %v5245_v2 = vld [vmem:[#allocation7 + $0x1e8] sm:$0xff]  }
  0xc7   : > { %4513 = vmatprep.subr.bf16.mxu1 %v5234_v6 }
  0xc8   : > { %4482 = vmatmul.mubr.bf16.gmra.mrb[8].mxu1 %v5673_v18  ;;  %v797_v18 = vld [vmem:[#allocation2 + $0xd9] sm:$0xff] }
  0xc9   : > { %4690 = vmatmul.mubr.bf16.gmra.mrb[24].mxu0 %v5802_v7  ;;  %4485 = vmatprep.mubr.bf16.mxu1 %v5690_v37  ;;  %v798_v37 = vld [vmem:[#allocation2 + $0xe1] sm:$0xff] }
  0xca   : > { %4693 = vmatprep.mubr.bf16.mxu0 %v5804_v11  ;;  %4514 = vmatpush3.bf16.msra.mxu1 %v5234_v6  ;;  %v5816_v32 = vpack.c.bf16 %v798_v37, %v797_v18  ;;  %v1181_v6 = vpack.c.bf16 %v1150_v23, %v1149_v57 }
  0xcb   : > { %4515 = vmatprep.subr.bf16.mxu1 %v5236_v63 }
  0xce   : > { %4516 = vmatpush3.bf16.msra.mxu1 %v5236_v63  ;;  %v5250_v63 = vld [vmem:[#allocation7 + $0x1f8] sm:$0xff]  }
  0xcf   : > { %4517 = vmatprep.subr.bf16.mxu1 %v5238_v13 }
  0xd0   : > { %4486 = vmatmul.mubr.bf16.gmra.mrb[12].mxu1 %v5695_v39  ;;  %v802_v39 = vld [vmem:[#allocation2 + $0x111] sm:$0xff] }
  0xd1   : > { %4694 = vmatmul.mubr.bf16.gmra.mrb[28].mxu0 %v2307_v15  ;;  %4489 = vmatprep.mubr.bf16.mxu1 %v5711_v0  ;;  %v803_v0 = vld [vmem:[#allocation2 + $0x121] sm:$0xff] }
  0xd2   : > { %4713 = vmatprep.mubr.bf16.mxu0 %v5652_v60  ;;  %4518 = vmatpush3.bf16.msra.mxu1 %v5238_v13  ;;  %v801_v60 = vld [vmem:[#allocation2 + $0x109] sm:$0xff]  ;;  %v5828_v49 = vpack.c.bf16 %v804_v36, %v803_v0  ;;  %v5263_v15 = vld [vmem:[#allocation7 + $0x100] sm:$0xff]  }
  0xd3   : > { %4519 = vmatprep.subr.bf16.mxu1 %v5240_v21  ;;  %v5826_v47 = vpack.c.bf16 %v802_v39, %v801_v60  ;;  %v5260_v0 = vld [vmem:[#allocation7 + $0x228] sm:$0xff]   ;;  %v5261_v36 = vld [vmem:[#allocation7 + $0x230] sm:$0xff]  }
  0xd6   : > { %4520 = vmatpush3.bf16.msra.mxu1 %v5240_v21  ;;  %v5256_v21 = vld [vmem:[#allocation7 + $0x210] sm:$0xff]  }
  0xd7   : > { %4553 = vmatprep.subr.bf16.mxu1 %v5814_v31 }
  0xd8   : > { %4490 = vmatmul.mubr.bf16.gmra.mrb[16].mxu1 %v5816_v32 }
  0xd9   : > { %4714 = vmatmul.mubr.bf16.vlgmr.msra.gmra.mrb[0].mxu0 %v5631_v28  ;;  %4493 = vmatprep.mubr.bf16.mxu1 %v5818_v34  ;;  %v805_v28 = vld [vmem:[#allocation2 + $0x139] sm:$0xff] }
  0xda   : > { %4746 = vmatpush3.bf16.msra.mxu0 %v5777_v40  ;;  %4717 = vmatprep.mubr.bf16.mxu0 %v5671_v17  ;;  %v806_v40 = vld [vmem:[#allocation2 + $0x141] sm:$0xff]  ;;  %v807_v17 = vld [vmem:[#allocation2 + $0x151] sm:$0xff] }
  0xdb   : > { %4747 = vmatprep.subr.bf16.mxu0 %v5237_v35  ;;  %v5834_v55 = vpack.c.bf16 %v806_v40, %v805_v28  ;;  %v5836_v58 = vpack.c.bf16 %v808_v53, %v807_v17  ;;  %v1522_v28 = vld [vmem:[#allocation2 + $0x30] sm:$0xff] }
  0xdc   : > { %v1525_v40 = vld [vmem:[#allocation2 + $0x50] sm:$0xff] }
  0xde   : > { %4748 = vmatpush3.bf16.msra.mxu0 %v5237_v35  ;;  %v5259_v35 = vld [vmem:[#allocation7 + $0x220] sm:$0xff]  }
  0xdf   : > { %4749 = vmatprep.subr.bf16.mxu0 %v5239_v45 }
  0xe0   : > { %4494 = vmatmul.mubr.bf16.gmra.mrb[20].mxu1 %v5826_v47 }
  0xe1   : > { %4718 = vmatmul.mubr.bf16.gmra.mrb[4].mxu0 %v5639_v42  ;;  %4497 = vmatprep.mubr.bf16.mxu1 %v5828_v49  ;;  %v809_v42 = vld [vmem:[#allocation2 + $0x169] sm:$0xff] }
  0xe2   : > { %4721 = vmatprep.mubr.bf16.mxu0 %v5693_v38  ;;  %4750 = vmatpush3.bf16.msra.mxu0 %v5239_v45  ;;  %v810_v38 = vld [vmem:[#allocation2 + $0x171] sm:$0xff] }
  0xe3   : > { %4751 = vmatprep.subr.bf16.mxu0 %v5241_v50  ;;  %v5842_v5 = vpack.c.bf16 %v810_v38, %v809_v42  ;;  %v1529_v42 = vld [vmem:[#allocation2 + $0x80] sm:$0xff]  ;;  %v5264_v38 = vld [vmem:[#allocation7 + $0x108] sm:$0xff]  }
  0xe6   : > { %4752 = vmatpush3.bf16.msra.mxu0 %v5241_v50  ;;  %v5262_v50 = vld [vmem:[#allocation7 + $0x238] sm:$0xff]  }
  0xe7   : > { %4753 = vmatprep.subr.bf16.mxu0 %v5243_v54 }
  0xe8   : > { %4498 = vmatmul.mubr.bf16.gmra.mrb[24].mxu1 %v5834_v55 }
  0xe9   : > { %4722 = vmatmul.mubr.bf16.gmra.mrb[8].mxu0 %v5655_v61  ;;  %4501 = vmatprep.mubr.bf16.mxu1 %v5836_v58  ;;  %v5252_v61 = vld [vmem:[#allocation7 + $0x200] sm:$0xff]  }
  0xea   : > { %4725 = vmatprep.mubr.bf16.mxu0 %v5714_v1  ;;  %4754 = vmatpush3.bf16.msra.mxu0 %v5243_v54  ;;  %v5244_v1 = vld [vmem:[#allocation7 + $0xc8] sm:$0xff]   ;;  %v1526_v54 = vld [vmem:[#allocation2 + $0x60] sm:$0xff] }
  0xeb   : > { %4755 = vmatprep.subr.bf16.mxu0 %v5245_v2 }
  0xee   : > { %4756 = vmatpush3.bf16.msra.mxu0 %v5245_v2  ;;  %v1528_v2 = vld [vmem:[#allocation2 + $0x78] sm:$0xff] }
  0xef   : > { %4757 = vmatprep.subr.bf16.mxu0 %v5247_v3  ;;  %v1556_v23 = vpack.c.bf16 %v1529_v42, %v1528_v2  ;;  %v1546_v2 = vld [vmem:[#allocation2 + $0x150] sm:$0xff]  ;;  %v1547_v42 = vld [vmem:[#allocation2 + $0x158] sm:$0xff] }
  0xf0   : > { %4502 = vmatmul.mubr.bf16.gmra.mrb[28].mxu1 %v5842_v5 }
  0xf1   : > { %4726 = vmatmul.mubr.bf16.gmra.mrb[12].mxu0 %v5676_v19  ;;  %4521 = vmatprep.mubr.bf16.mxu1 %v1181_v6  ;;  %v5246_v19 = vld [vmem:[#allocation7 + $0xd0] sm:$0xff]  }
  0xf2   : > { %4729 = vmatprep.mubr.bf16.mxu0 %v5733_v26  ;;  %4758 = vmatpush3.bf16.msra.mxu0 %v5247_v3  ;;  %v5249_v26 = vld [vmem:[#allocation7 + $0xd8] sm:$0xff]   ;;  %v5265_v3 = vld [vmem:[#allocation7 + $0x110] sm:$0xff]  }
  0xf3   : > { %4759 = vmatprep.subr.bf16.mxu0 %v5250_v63  ;;  %v1530_v6 = vld [vmem:[#allocation2 + $0x90] sm:$0xff] }
  0xf6   : > { %4760 = vmatpush3.bf16.msra.mxu0 %v5250_v63  ;;  %v1531_v63 = vld [vmem:[#allocation2 + $0x98] sm:$0xff] }
  0xf7   : > { %4793 = vmatprep.subr.bf16.mxu0 %v5252_v61 }
  0xf8   : > { %4522 = vmatmul.mubr.bf16.vlgmr.msra.gmra.mrb[0].mxu1 %v5718_v4  ;;  %v5857_v4 = vld [vmem:[%s5610_s11 + $0xc0] sm:$0xff] }
  0xf9   : > { %4730 = vmatmul.mubr.bf16.gmra.mrb[16].mxu0 %v5686_v33  ;;  %4554 = vmatpush3.bf16.msra.mxu1 %v5814_v31  ;;  %v5251_v33 = vld [vmem:[#allocation7 + $0xe0] sm:$0xff]   ;;  %v3014_v31 = vld [vmem:[#allocation2 + $0xc9] sm:$0xff] }
  0xfa   : > { %4525 = vmatprep.mubr.bf16.mxu1 %v5730_v25  ;;  %4733 = vmatprep.mubr.bf16.mxu0 %v5750_v52  ;;  %v5253_v25 = vld [vmem:[#allocation7 + $0xe8] sm:$0xff]   ;;  %v3039_v39 = vpack.c.bf16 %v3014_v31, %v3013_v27 }
  0xfb   : > { %4555 = vmatprep.subr.bf16.mxu1 %v5244_v1  ;;  %v3375_v27 = vld [vmem:[#allocation2 + $0x62] sm:$0xff]  ;;  %v3376_v31 = vld [vmem:[#allocation2 + $0x6a] sm:$0xff] }
  0xfd   : > { %4556 = vmatpush3.bf16.msra.mxu1 %v5244_v1  ;;  %v1533_v1 = vld [vmem:[#allocation2 + $0xb0] sm:$0xff] }
  0xfe   : > { %4557 = vmatprep.subr.bf16.mxu1 %v5246_v19 }
 0x100   : > { %4526 = vmatmul.mubr.bf16.gmra.mrb[4].mxu1 %v5736_v29  ;;  %v3002_v29 = vld [vmem:[#allocation2 + $0x39] sm:$0xff] }
 0x101   : > { %4734 = vmatmul.mubr.bf16.gmra.mrb[20].mxu0 %v5700_v46  ;;  %4529 = vmatprep.mubr.bf16.mxu1 %v5747_v51  ;;  %v3001_v46 = vld [vmem:[#allocation2 + $0x31] sm:$0xff] }
 0x102   : > { %4737 = vmatprep.mubr.bf16.mxu0 %v5762_v9  ;;  %4558 = vmatpush3.bf16.msra.mxu1 %v5246_v19  ;;  %v5255_v51 = vld [vmem:[#allocation7 + $0xf0] sm:$0xff]   ;;  %v3033_v52 = vpack.c.bf16 %v3002_v29, %v3001_v46  ;;  %v5257_v9 = vld [vmem:[#allocation7 + $0xf8] sm:$0xff]   ;;  %v3029_v19 = vld [vmem:[#allocation2 + $0x181] sm:$0xff] }
 0x103   : > { %4559 = vmatprep.subr.bf16.mxu1 %v5249_v26 }
 0x106   : > { %4560 = vmatpush3.bf16.msra.mxu1 %v5249_v26  ;;  %v3030_v26 = vld [vmem:[#allocation2 + $0x189] sm:$0xff] }
 0x107   : > { %4561 = vmatprep.subr.bf16.mxu1 %v5251_v33  ;;  %v5879_v29 = vpack.c.bf16 %v3030_v26, %v3029_v19 }
 0x108   : > { %4530 = vmatmul.mubr.bf16.gmra.mrb[8].mxu1 %v5753_v56  ;;  %v3004_v56 = vld [vmem:[#allocation2 + $0x51] sm:$0xff] }
 0x109   : > { %4738 = vmatmul.mubr.bf16.gmra.mrb[24].mxu0 %v5709_v62  ;;  %4533 = vmatprep.mubr.bf16.mxu1 %v5759_v8  ;;  %v3003_v62 = vld [vmem:[#allocation2 + $0x49] sm:$0xff]  ;;  %v3005_v8 = vld [vmem:[#allocation2 + $0x61] sm:$0xff] }
 0x10a   : > { %4741 = vmatprep.mubr.bf16.mxu0 %v5857_v4  ;;  %4562 = vmatpush3.bf16.msra.mxu1 %v5251_v33  ;;  %v3034_v12 = vpack.c.bf16 %v3004_v56, %v3003_v62  ;;  %v3035_v13 = vpack.c.bf16 %v3006_v16, %v3005_v8  ;;  %v5266_v33 = vld [vmem:[#allocation7 + $0x118] sm:$0xff]   ;;  %v3032_v56 = vld [vmem:[#allocation2 + $0x1a1] sm:$0xff] }
 0x10b   : > { %4563 = vmatprep.subr.bf16.mxu1 %v5253_v25  ;;  %v3031_v62 = vld [vmem:[#allocation2 + $0x199] sm:$0xff] }
 0x10c   : > { %v1536_v8 = vld [vmem:[#allocation2 + $0xd8] sm:$0xff]  ;;  %v1537_v16 = vld [vmem:[#allocation2 + $0xe0] sm:$0xff] }
 0x10e   : > { %4564 = vmatpush3.bf16.msra.mxu1 %v5253_v25  ;;  %v1557_v25 = vpack.c.bf16 %v1531_v63, %v1530_v6  ;;  %v3383_v6 = vld [vmem:[#allocation2 + $0xc2] sm:$0xff]  ;;  %v3384_v63 = vld [vmem:[#allocation2 + $0xca] sm:$0xff] }
 0x10f   : > { %4565 = vmatprep.subr.bf16.mxu1 %v5255_v51  ;;  %v3409_v26 = vpack.c.bf16 %v3384_v63, %v3383_v6 }
 0x110   : > { %4534 = vmatmul.mubr.bf16.gmra.mrb[12].mxu1 %v5764_v10  ;;  %v3007_v10 = vld [vmem:[#allocation2 + $0x79] sm:$0xff] }
 0x111   : > { %4742 = vmatmul.mubr.bf16.gmra.mrb[28].mxu0 %v5782_v43  ;;  %4537 = vmatprep.mubr.bf16.mxu1 %v5770_v24  ;;  %v3008_v24 = vld [vmem:[#allocation2 + $0x81] sm:$0xff]  ;;  %v3009_v43 = vld [vmem:[#allocation2 + $0x91] sm:$0xff] }
 0x112   : > { %4761 = vmatprep.mubr.bf16.mxu0 %v3033_v52  ;;  %4566 = vmatpush3.bf16.msra.mxu1 %v5255_v51  ;;  %v3036_v18 = vpack.c.bf16 %v3008_v24, %v3007_v10  ;;  %v3037_v37 = vpack.c.bf16 %v3010_v20, %v3009_v43  ;;  %v5267_v51 = vld [vmem:[#allocation7 + $0x120] sm:$0xff]   ;;  %v3048_v10 = vpack.c.bf16 %v3032_v56, %v3031_v62  ;;  %v5269_v20 = vld [vmem:[#allocation7 + $0x130] sm:$0xff]  }
 0x113   : > { %4567 = vmatprep.subr.bf16.mxu1 %v5257_v9  ;;  %v1534_v52 = vld [vmem:[#allocation2 + $0xc0] sm:$0xff]  ;;  %v1560_v24 = vpack.c.bf16 %v1537_v16, %v1536_v8  ;;  %v3389_v62 = vld [vmem:[#allocation2 + $0x10a] sm:$0xff]  ;;  %v3390_v56 = vld [vmem:[#allocation2 + $0x112] sm:$0xff] }
 0x114   : > { %v3391_v8 = vld [vmem:[#allocation2 + $0x122] sm:$0xff]  ;;  %v3392_v16 = vld [vmem:[#allocation2 + $0x12a] sm:$0xff] }
 0x116   : > { %4568 = vmatpush3.bf16.msra.mxu1 %v5257_v9  ;;  %v1535_v9 = vld [vmem:[#allocation2 + $0xc8] sm:$0xff] }
 0x117   : > { %4841 = vmatprep.subr.bf16.mxu1 %v5263_v15 }
 0x118   : > { %4538 = vmatmul.mubr.bf16.gmra.mrb[16].mxu1 %v5772_v30  ;;  %v3011_v30 = vld [vmem:[#allocation2 + $0xa9] sm:$0xff] }
 0x119   : > { %4762 = vmatmul.mubr.bf16.vlgmr.msra.gmra.mrb[0].mxu0 %v3034_v12  ;;  %4541 = vmatprep.mubr.bf16.mxu1 %v5779_v41  ;;  %v3012_v41 = vld [vmem:[#allocation2 + $0xb1] sm:$0xff] }
 0x11a   : > { %4794 = vmatpush3.bf16.msra.mxu0 %v5252_v61  ;;  %4765 = vmatprep.mubr.bf16.mxu0 %v3035_v13  ;;  %v3038_v60 = vpack.c.bf16 %v3012_v41, %v3011_v30  ;;  %v1532_v61 = vld [vmem:[#allocation2 + $0xa8] sm:$0xff]  ;;  %v3371_v12 = vld [vmem:[#allocation2 + $0x32] sm:$0xff]  ;;  %v3372_v13 = vld [vmem:[#allocation2 + $0x3a] sm:$0xff] }
 0x11b   : > { %4795 = vmatprep.subr.bf16.mxu0 %v5254_v14  ;;  %v1558_v46 = vpack.c.bf16 %v1533_v1, %v1532_v61  ;;  %v3403_v43 = vpack.c.bf16 %v3372_v13, %v3371_v12  ;;  %v1540_v30 = vld [vmem:[#allocation2 + $0x108] sm:$0xff]  ;;  %v1541_v41 = vld [vmem:[#allocation2 + $0x110] sm:$0xff]  ;;  %v1565_v61 = vpack.c.bf16 %v1547_v42, %v1546_v2  ;;  %v3412_v12 = vpack.c.bf16 %v3390_v56, %v3389_v62 }
 0x11c   : > { %v3413_v13 = vpack.c.bf16 %v3392_v16, %v3391_v8 }
 0x11e   : > { %4796 = vmatpush3.bf16.msra.mxu0 %v5254_v14  ;;  %v5268_v14 = vld [vmem:[#allocation7 + $0x128] sm:$0xff]  }
 0x11f   : > { %4797 = vmatprep.subr.bf16.mxu0 %v5256_v21 }
 0x120   : > { %4542 = vmatmul.mubr.bf16.gmra.mrb[20].mxu1 %v5784_v44  ;;  %v1520_v44 = vld [vmem:[#allocation2 + $0x18] sm:$0xff] }
 0x121   : > { %4766 = vmatmul.mubr.bf16.gmra.mrb[4].mxu0 %v3036_v18  ;;  %4545 = vmatprep.mubr.bf16.mxu1 %v5794_v59  ;;  %v1521_v59 = vld [vmem:[#allocation2 + $0x20] sm:$0xff]  ;;  %v1539_v18 = vld [vmem:[#allocation2 + $0xf8] sm:$0xff] }
 0x122   : > { %4769 = vmatprep.mubr.bf16.mxu0 %v3037_v37  ;;  %4798 = vmatpush3.bf16.msra.mxu0 %v5256_v21  ;;  %v1552_v45 = vpack.c.bf16 %v1521_v59, %v1520_v44  ;;  %v1538_v21 = vld [vmem:[#allocation2 + $0xf0] sm:$0xff]  ;;  %v3405_v44 = vpack.c.bf16 %v3376_v31, %v3375_v27  ;;  %v1542_v59 = vld [vmem:[#allocation2 + $0x120] sm:$0xff] }
 0x123   : > { %4799 = vmatprep.subr.bf16.mxu0 %v5258_v22  ;;  %v3373_v37 = vld [vmem:[#allocation2 + $0x4a] sm:$0xff] }
 0x126   : > { %4800 = vmatpush3.bf16.msra.mxu0 %v5258_v22  ;;  %v3374_v22 = vld [vmem:[#allocation2 + $0x52] sm:$0xff] }
 0x127   : > { %4801 = vmatprep.subr.bf16.mxu0 %v5259_v35 }
 0x128   : > { %4546 = vmatmul.mubr.bf16.gmra.mrb[24].mxu1 %v5796_v48  ;;  %v1523_v48 = vld [vmem:[#allocation2 + $0x38] sm:$0xff] }
 0x129   : > { %4770 = vmatmul.mubr.bf16.gmra.mrb[8].mxu0 %v3038_v60  ;;  %4549 = vmatprep.mubr.bf16.mxu1 %v5802_v7  ;;  %v1524_v7 = vld [vmem:[#allocation2 + $0x48] sm:$0xff]  ;;  %v1553_v17 = vpack.c.bf16 %v1523_v48, %v1522_v28  ;;  %v1561_v60 = vpack.c.bf16 %v1539_v18, %v1538_v21  ;;  %v1544_v28 = vld [vmem:[#allocation2 + $0x138] sm:$0xff]  ;;  %v1545_v48 = vld [vmem:[#allocation2 + $0x140] sm:$0xff] }
 0x12a   : > { %4773 = vmatprep.mubr.bf16.mxu0 %v3039_v39  ;;  %4802 = vmatpush3.bf16.msra.mxu0 %v5259_v35  ;;  %v1554_v53 = vpack.c.bf16 %v1525_v40, %v1524_v7  ;;  %v5270_v35 = vld [vmem:[#allocation7 + $0x138] sm:$0xff]   ;;  %v3404_v39 = vpack.c.bf16 %v3374_v22, %v3373_v37  ;;  %v3399_v21 = vld [vmem:[#allocation2 + $0x182] sm:$0xff] }
 0x12b   : > { %4803 = vmatprep.subr.bf16.mxu0 %v5260_v0  ;;  %v3379_v7 = vld [vmem:[#allocation2 + $0x92] sm:$0xff]  ;;  %v3380_v40 = vld [vmem:[#allocation2 + $0x9a] sm:$0xff]  ;;  %v3402_v22 = vld [vmem:[#allocation2 + $0x1a2] sm:$0xff] }
 0x12e   : > { %4804 = vmatpush3.bf16.msra.mxu0 %v5260_v0  ;;  %v1562_v0 = vpack.c.bf16 %v1541_v41, %v1540_v30 }
 0x12f   : > { %4805 = vmatprep.subr.bf16.mxu0 %v5261_v36 }
 0x130   : > { %4550 = vmatmul.mubr.bf16.gmra.mrb[28].mxu1 %v5804_v11  ;;  %v1527_v11 = vld [vmem:[#allocation2 + $0x68] sm:$0xff] }
 0x131   : > { %4774 = vmatmul.mubr.bf16.gmra.mrb[12].mxu0 %v5816_v32  ;;  %4569 = vmatprep.mubr.bf16.mxu1 %v1552_v45  ;;  %v1555_v57 = vpack.c.bf16 %v1527_v11, %v1526_v54  ;;  %v3377_v45 = vld [vmem:[#allocation2 + $0x7a] sm:$0xff]  ;;  %v1564_v54 = vpack.c.bf16 %v1545_v48, %v1544_v28  ;;  %v3407_v11 = vpack.c.bf16 %v3380_v40, %v3379_v7 }
 0x132   : > { %4777 = vmatprep.mubr.bf16.mxu0 %v5818_v34  ;;  %4806 = vmatpush3.bf16.msra.mxu0 %v5261_v36  ;;  %v1543_v36 = vld [vmem:[#allocation2 + $0x128] sm:$0xff] }
 0x133   : > { %4807 = vmatprep.subr.bf16.mxu0 %v5262_v50 }
 0x136   : > { %4808 = vmatpush3.bf16.msra.mxu0 %v5262_v50  ;;  %v3378_v50 = vld [vmem:[#allocation2 + $0x82] sm:$0xff] }
 0x138   : > { %4570 = vmatmul.mubr.bf16.vlgmr.msra.gmra.mrb[0].mxu1 %v1553_v17  ;;  %v1563_v17 = vpack.c.bf16 %v1543_v36, %v1542_v59 }
 0x139   : > { %4778 = vmatmul.mubr.bf16.gmra.mrb[16].mxu0 %v5826_v47  ;;  %4849 = vmatpush3.bf16.msra.mxu1 %v5263_v15  ;;  %v1559_v15 = vpack.c.bf16 %v1535_v9, %v1534_v52 }
 0x13a   : > { %4573 = vmatprep.mubr.bf16.mxu1 %v1554_v53  ;;  %4781 = vmatprep.mubr.bf16.mxu0 %v5828_v49  ;;  %v3406_v53 = vpack.c.bf16 %v3378_v50, %v3377_v45 }
 0x13b   : > { %4842 = vmatprep.subr.bf16.mxu1 %v5264_v38 }
 0x13d   : > { %4850 = vmatpush3.bf16.msra.mxu1 %v5264_v38  ;;  %v3381_v38 = vld [vmem:[#allocation2 + $0xaa] sm:$0xff] }
 0x13e   : > { %4843 = vmatprep.subr.bf16.mxu1 %v5265_v3 }
 0x140   : > { %4574 = vmatmul.mubr.bf16.gmra.mrb[4].mxu1 %v1555_v57  ;;  %v3382_v57 = vld [vmem:[#allocation2 + $0xb2] sm:$0xff] }
 0x141   : > { %4782 = vmatmul.mubr.bf16.gmra.mrb[20].mxu0 %v5834_v55  ;;  %4577 = vmatprep.mubr.bf16.mxu1 %v1556_v23  ;;  %v1548_v23 = vld [vmem:[#allocation2 + $0x168] sm:$0xff]  ;;  %v3408_v1 = vpack.c.bf16 %v3382_v57, %v3381_v38 }
 0x142   : > { %4785 = vmatprep.mubr.bf16.mxu0 %v5836_v58  ;;  %4851 = vmatpush3.bf16.msra.mxu1 %v5265_v3  ;;  %v1549_v3 = vld [vmem:[#allocation2 + $0x170] sm:$0xff] }
 0x143   : > { %4844 = vmatprep.subr.bf16.mxu1 %v5266_v33  ;;  %v1566_v19 = vpack.c.bf16 %v1549_v3, %v1548_v23 }
 0x146   : > { %4852 = vmatpush3.bf16.msra.mxu1 %v5266_v33  ;;  %v3385_v33 = vld [vmem:[#allocation2 + $0xda] sm:$0xff] }
 0x147   : > { %4845 = vmatprep.subr.bf16.mxu1 %v5267_v51 }
 0x148   : > { %4578 = vmatmul.mubr.bf16.gmra.mrb[8].mxu1 %v1557_v25  ;;  %v3386_v25 = vld [vmem:[#allocation2 + $0xe2] sm:$0xff] }
 0x149   : > { %4786 = vmatmul.mubr.bf16.gmra.mrb[24].mxu0 %v5842_v5  ;;  %4581 = vmatprep.mubr.bf16.mxu1 %v1558_v46  ;;  %v3387_v46 = vld [vmem:[#allocation2 + $0xf2] sm:$0xff]  ;;  %v3410_v52 = vpack.c.bf16 %v3386_v25, %v3385_v33 }
 0x14a   : > { %4789 = vmatprep.mubr.bf16.mxu0 %v5879_v29  ;;  %4853 = vmatpush3.bf16.msra.mxu1 %v5267_v51  ;;  %v3388_v51 = vld [vmem:[#allocation2 + $0xfa] sm:$0xff] }
 0x14b   : > { %4846 = vmatprep.subr.bf16.mxu1 %v5268_v14  ;;  %v3411_v9 = vpack.c.bf16 %v3388_v51, %v3387_v46 }
 0x14e   : > { %4854 = vmatpush3.bf16.msra.mxu1 %v5268_v14  ;;  %v3393_v14 = vld [vmem:[#allocation2 + $0x13a] sm:$0xff] }
 0x14f   : > { %4847 = vmatprep.subr.bf16.mxu1 %v5269_v20 }
 0x150   : > { %4582 = vmatmul.mubr.bf16.gmra.mrb[12].mxu1 %v1559_v15  ;;  %v3394_v15 = vld [vmem:[#allocation2 + $0x142] sm:$0xff] }
 0x151   : > { %4790 = vmatmul.mubr.bf16.gmra.mrb[28].mxu0 %v3048_v10  ;;  %4585 = vmatprep.mubr.bf16.mxu1 %v1560_v24  ;;  %v3395_v10 = vld [vmem:[#allocation2 + $0x152] sm:$0xff]  ;;  %v3414_v24 = vpack.c.bf16 %v3394_v15, %v3393_v14 }
 0x152   : > { %4809 = vmatprep.mubr.bf16.mxu0 %v3403_v43  ;;  %4855 = vmatpush3.bf16.msra.mxu1 %v5269_v20  ;;  %v3398_v20 = vld [vmem:[#allocation2 + $0x172] sm:$0xff] }
 0x153   : > { %4848 = vmatprep.subr.bf16.mxu1 %v5270_v35 }
 0x156   : > { %4856 = vmatpush3.bf16.msra.mxu1 %v5270_v35 }
 0x158   : > { %4586 = vmatmul.mubr.bf16.gmra.mrb[16].mxu1 %v1561_v60 }
 0x159   : > { %4810 = vmatmul.mubr.bf16.vlgmr.msra.gmra.mrb[0].mxu0 %v3404_v39  ;;  %4589 = vmatprep.mubr.bf16.mxu1 %v1562_v0 }
 0x15a   : > { %4813 = vmatprep.mubr.bf16.mxu0 %v3405_v44 }
 0x160   : > { %4590 = vmatmul.mubr.bf16.gmra.mrb[20].mxu1 %v1563_v17 }
 0x161   : > { %4814 = vmatmul.mubr.bf16.gmra.mrb[4].mxu0 %v3406_v53  ;;  %4593 = vmatprep.mubr.bf16.mxu1 %v1564_v54 }
 0x162   : > { %4817 = vmatprep.mubr.bf16.mxu0 %v3407_v11 }
 0x168   : > { %4594 = vmatmul.mubr.bf16.gmra.mrb[24].mxu1 %v1565_v61 }
 0x169   : > { %4818 = vmatmul.mubr.bf16.gmra.mrb[8].mxu0 %v3408_v1  ;;  %4597 = vmatprep.mubr.bf16.mxu1 %v1566_v19 }
 0x16a   : > { %4821 = vmatprep.mubr.bf16.mxu0 %v3409_v26 }
 0x170   : > { %4598 = vmatmul.mubr.bf16.gmra.mrb[28].mxu1 %v5857_v4  ;;  %v3396_v4 = vld [vmem:[#allocation2 + $0x15a] sm:$0xff] }
 0x171   : > { %4822 = vmatmul.mubr.bf16.gmra.mrb[12].mxu0 %v3410_v52  ;;  %4633 = vmatprep.mubr.bf16.mxu1 %v5816_v32  ;;  %v3415_v43 = vpack.c.bf16 %v3396_v4, %v3395_v10  ;;  %v3397_v32 = vld [vmem:[#allocation2 + $0x16a] sm:$0xff] }
 0x172   : > { %4825 = vmatprep.mubr.bf16.mxu0 %v3411_v9  ;;  %v3416_v18 = vpack.c.bf16 %v3398_v20, %v3397_v32 }
 0x178   : > { %4634 = vmatmul.mubr.bf16.vlgmr.msra.gmra.mrb[16].mxu1 %v5818_v34  ;;  %v3400_v34 = vld [vmem:[#allocation2 + $0x18a] sm:$0xff] }
 0x179   : > { %4826 = vmatmul.mubr.bf16.gmra.mrb[16].mxu0 %v3412_v12  ;;  %4637 = vmatprep.mubr.bf16.mxu1 %v5826_v47  ;;  %v3417_v37 = vpack.c.bf16 %v3400_v34, %v3399_v21  ;;  %v3401_v47 = vld [vmem:[#allocation2 + $0x19a] sm:$0xff] }
 0x17a   : > { %4829 = vmatprep.mubr.bf16.mxu0 %v3413_v13  ;;  %v3418_v30 = vpack.c.bf16 %v3402_v22, %v3401_v47 }
 0x180   : > { %4638 = vmatmul.mubr.bf16.gmra.mrb[20].mxu1 %v5828_v49 }
 0x181   : > { %4830 = vmatmul.mubr.bf16.gmra.mrb[20].mxu0 %v3414_v24  ;;  %4641 = vmatprep.mubr.bf16.mxu1 %v5834_v55 }
 0x182   : > { %4833 = vmatprep.mubr.bf16.mxu0 %v3415_v43 }
 0x188   : > { %4642 = vmatmul.mubr.bf16.gmra.mrb[24].mxu1 %v5836_v58 }
 0x189   : > { %4834 = vmatmul.mubr.bf16.gmra.mrb[24].mxu0 %v3416_v18  ;;  %4645 = vmatprep.mubr.bf16.mxu1 %v5842_v5 }
 0x18a   : > { %4837 = vmatprep.mubr.bf16.mxu0 %v3417_v37 }
 0x190   : > { %4646 = vmatmul.mubr.bf16.gmra.mrb[28].mxu1 %v5879_v29 }
 0x191   : > { %4838 = vmatmul.mubr.bf16.gmra.mrb[28].mxu0 %v3418_v30 }
 0x20b   : > { %v4571_v49 = vpop.f32.mrb[0].mxu1 }
 0x20c   : > { %v1699_v55 = vpop.f32.mrb[1].mxu1 }
 0x20d   : > { %v4572_v41 = vpop.f32.mrb[2].mxu1 }
 0x20e   : > { %v1702_v27 = vpop.f32.mrb[3].mxu1 }
 0x213   : > { %v4575_v31 = vpop.f32.mrb[4].mxu1 }
 0x214   : > { %v1715_v35 = vpop.f32.mrb[5].mxu1 }
 0x215   : > { %v4576_v60 = vpop.f32.mrb[6].mxu1 }
 0x216   : > { %v1718_v39 = vpop.f32.mrb[7].mxu1 }
 0x21b   : > { %v4579_v58 = vpop.f32.mrb[8].mxu1 }
 0x21c   : > { %v1731_v0 = vpop.f32.mrb[9].mxu1 }
 0x21d   : > { %v4580_v44 = vpop.f32.mrb[10].mxu1 }
 0x21e   : > { %v5892_v5 = vpop.f32.mrb[11].mxu1 }
 0x223   : > { %v5894_v59 = vpop.f32.mrb[12].mxu1 }
 0x224   : > { %v5896_v36 = vpop.f32.mrb[13].mxu1 }
 0x225   : > { %v5898_v29 = vpop.f32.mrb[14].mxu1 }
 0x226   : > { %v5900_v45 = vpop.f32.mrb[15].mxu1 }
 0x22c   : > { %v4811_v50 = vpop.f32.mrb[0].mxu0 }
 0x22d   : > { %v4857_v28 = vadd.f32 %v4811_v50, %v4571_v49  ;;  %v3550_v48 = vpop.f32.mrb[1].mxu0 }
 0x22e   : > { %v4858_v7 = vadd.f32 %v3550_v48, %v1699_v55  ;;  %v4812_v40 = vpop.f32.mrb[2].mxu0 }
 0x22f   : > { %3775 = vst [vmem:[%s5903_s20 + $0x10] sm:$0xff] %v4857_v28  ;;  %v4859_v17 = vadd.f32 %v4812_v40, %v4572_v41  ;;  %v3553_v53 = vpop.f32.mrb[3].mxu0  ;;  %v3845_v38 = vmul.f32 %v4857_v28, %v4857_v28 }
 0x230   : > { %3773 = vst [vmem:[%s5903_s20] sm:$0xff] %v4858_v7  ;;  %v4860_v54 = vadd.f32 %v3553_v53, %v1702_v27  ;;  %v3843_v11 = vmul.f32 %v4858_v7, %v4858_v7 }
 0x231   : > { %3776 = vst [vmem:[%s5903_s20 + $0x18] sm:$0xff] %v4859_v17  ;;  %v3846_v61 = vmul.f32 %v4859_v17, %v4859_v17 }
 0x232   : > { %3774 = vst [vmem:[%s5903_s20 + $0x8] sm:$0xff] %v4860_v54  ;;  %v3805_v2 = vadd.f32 %v4860_v54, %v4858_v7  ;;  %v3844_v42 = vmul.f32 %v4860_v54, %v4860_v54 }
 0x234   : > { %v3806_v57 = vadd.f32 %v4857_v28, %v3805_v2  ;;  %v3875_v23 = vadd.f32 %v3844_v42, %v3843_v11  ;;  %v4815_v3 = vpop.f32.mrb[4].mxu0 }
 0x235   : > { %v4861_v6 = vadd.f32 %v4815_v3, %v4575_v31  ;;  %v3566_v63 = vpop.f32.mrb[5].mxu0 }
 0x236   : > { %v3876_v1 = vadd.f32 %v3875_v23, %v3845_v38  ;;  %v4862_v19 = vadd.f32 %v3566_v63, %v1715_v35  ;;  %v3807_v26 = vadd.f32 %v4859_v17, %v3806_v57  ;;  %v4816_v33 = vpop.f32.mrb[6].mxu0 }
 0x237   : > { %3779 = vst [vmem:[%s5903_s20 + $0x30] sm:$0xff] %v4861_v6  ;;  %v4863_v25 = vadd.f32 %v4816_v33, %v4576_v60  ;;  %v3569_v46 = vpop.f32.mrb[7].mxu0  ;;  %v3849_v12 = vmul.f32 %v4861_v6, %v4861_v6 }
 0x238   : > { %3777 = vst [vmem:[%s5903_s20 + $0x20] sm:$0xff] %v4862_v19  ;;  %v3808_v51 = vadd.f32 %v4862_v19, %v3807_v26  ;;  %v3847_v52 = vmul.f32 %v4862_v19, %v4862_v19  ;;  %v3877_v9 = vadd.f32 %v3876_v1, %v3846_v61  ;;  %v4864_v62 = vadd.f32 %v3569_v46, %v1718_v39 }
 0x239   : > { %3780 = vst [vmem:[%s5903_s20 + $0x38] sm:$0xff] %v4863_v25  ;;  %v3850_v24 = vmul.f32 %v4863_v25, %v4863_v25 }
 0x23a   : > { %v3878_v56 = vadd.f32 %v3877_v9, %v3847_v52  ;;  %3778 = vst [vmem:[%s5903_s20 + $0x28] sm:$0xff] %v4864_v62  ;;  %v3809_v8 = vadd.f32 %v4864_v62, %v3808_v51  ;;  %v3848_v16 = vmul.f32 %v4864_v62, %v4864_v62 }
 0x23c   : > { %v3810_v13 = vadd.f32 %v4861_v6, %v3809_v8  ;;  %v3879_v14 = vadd.f32 %v3878_v56, %v3848_v16  ;;  %v4819_v15 = vpop.f32.mrb[8].mxu0 }
 0x23d   : > { %v4865_v10 = vadd.f32 %v4819_v15, %v4579_v58  ;;  %v3582_v4 = vpop.f32.mrb[9].mxu0 }
 0x23e   : > { %v3880_v43 = vadd.f32 %v3879_v14, %v3849_v12  ;;  %v4866_v32 = vadd.f32 %v3582_v4, %v1731_v0  ;;  %v3811_v20 = vadd.f32 %v4863_v25, %v3810_v13  ;;  %v4820_v21 = vpop.f32.mrb[10].mxu0 }
 0x23f   : > { %3783 = vst [vmem:[%s5903_s20 + $0x50] sm:$0xff] %v4865_v10  ;;  %v4867_v34 = vadd.f32 %v4820_v21, %v4580_v44  ;;  %v3585_v18 = vpop.f32.mrb[11].mxu0  ;;  %v3853_v27 = vmul.f32 %v4865_v10, %v4865_v10 }
 0x240   : > { %3781 = vst [vmem:[%s5903_s20 + $0x40] sm:$0xff] %v4866_v32  ;;  %v3812_v37 = vadd.f32 %v4866_v32, %v3811_v20  ;;  %v3851_v47 = vmul.f32 %v4866_v32, %v4866_v32  ;;  %v3881_v22 = vadd.f32 %v3880_v43, %v3850_v24  ;;  %v4868_v30 = vadd.f32 %v3585_v18, %v5892_v5 }
 0x241   : > { %3784 = vst [vmem:[%s5903_s20 + $0x58] sm:$0xff] %v4867_v34  ;;  %v3854_v0 = vmul.f32 %v4867_v34, %v4867_v34 }
 0x242   : > { %v3882_v49 = vadd.f32 %v3881_v22, %v3851_v47  ;;  %3782 = vst [vmem:[%s5903_s20 + $0x48] sm:$0xff] %v4868_v30  ;;  %v3813_v55 = vadd.f32 %v4868_v30, %v3812_v37  ;;  %v3852_v41 = vmul.f32 %v4868_v30, %v4868_v30 }
 0x244   : > { %v3814_v31 = vadd.f32 %v4865_v10, %v3813_v55  ;;  %v3883_v35 = vadd.f32 %v3882_v49, %v3852_v41  ;;  %v4823_v60 = vpop.f32.mrb[12].mxu0 }
 0x245   : > { %v4869_v39 = vadd.f32 %v4823_v60, %v5894_v59  ;;  %v3598_v58 = vpop.f32.mrb[13].mxu0 }
 0x246   : > { %v3884_v44 = vadd.f32 %v3883_v35, %v3853_v27  ;;  %v4870_v5 = vadd.f32 %v3598_v58, %v5896_v36  ;;  %v3815_v50 = vadd.f32 %v4867_v34, %v3814_v31  ;;  %v4824_v28 = vpop.f32.mrb[14].mxu0 }
 0x247   : > { %3787 = vst [vmem:[%s5903_s20 + $0x70] sm:$0xff] %v4869_v39  ;;  %v4871_v48 = vadd.f32 %v4824_v28, %v5898_v29  ;;  %v3601_v7 = vpop.f32.mrb[15].mxu0  ;;  %v3857_v36 = vmul.f32 %v4869_v39, %v4869_v39 }
 0x248   : > { %3785 = vst [vmem:[%s5903_s20 + $0x60] sm:$0xff] %v4870_v5  ;;  %v3816_v40 = vadd.f32 %v4870_v5, %v3815_v50  ;;  %v3855_v17 = vmul.f32 %v4870_v5, %v4870_v5  ;;  %v3885_v53 = vadd.f32 %v3884_v44, %v3854_v0  ;;  %v4872_v54 = vadd.f32 %v3601_v7, %v5900_v45 }
 0x249   : > { %3788 = vst [vmem:[%s5903_s20 + $0x78] sm:$0xff] %v4871_v48  ;;  %v3858_v61 = vmul.f32 %v4871_v48, %v4871_v48 }
 0x24a   : > { %v3886_v59 = vadd.f32 %v3885_v53, %v3855_v17  ;;  %3786 = vst [vmem:[%s5903_s20 + $0x68] sm:$0xff] %v4872_v54  ;;  %v3817_v11 = vadd.f32 %v4872_v54, %v3816_v40  ;;  %v3856_v2 = vmul.f32 %v4872_v54, %v4872_v54 }
 0x24b   : > { %v4635_v42 = vpop.f32.mrb[16].mxu1 }
 0x24c   : > { %v3818_v38 = vadd.f32 %v4869_v39, %v3817_v11  ;;  %v3887_v57 = vadd.f32 %v3886_v59, %v3856_v2  ;;  %v4827_v23 = vpop.f32.mrb[16].mxu0  ;;  %v2133_v29 = vpop.f32.mrb[17].mxu1 }
 0x24d   : > { %v4873_v3 = vadd.f32 %v4827_v23, %v4635_v42  ;;  %v3614_v6 = vpop.f32.mrb[17].mxu0  ;;  %v4636_v63 = vpop.f32.mrb[18].mxu1 }
 0x24e   : > { %v3888_v45 = vadd.f32 %v3887_v57, %v3857_v36  ;;  %v4874_v1 = vadd.f32 %v3614_v6, %v2133_v29  ;;  %v3819_v19 = vadd.f32 %v4871_v48, %v3818_v38  ;;  %v4828_v26 = vpop.f32.mrb[18].mxu0  ;;  %v2136_v33 = vpop.f32.mrb[19].mxu1 }
 0x24f   : > { %3791 = vst [vmem:[%s5903_s20 + $0x90] sm:$0xff] %v4873_v3  ;;  %v4875_v25 = vadd.f32 %v4828_v26, %v4636_v63  ;;  %v3617_v46 = vpop.f32.mrb[19].mxu0  ;;  %v3861_v13 = vmul.f32 %v4873_v3, %v4873_v3 }
 0x250   : > { %3789 = vst [vmem:[%s5903_s20 + $0x80] sm:$0xff] %v4874_v1  ;;  %v3820_v51 = vadd.f32 %v4874_v1, %v3819_v19  ;;  %v3859_v52 = vmul.f32 %v4874_v1, %v4874_v1  ;;  %v3889_v9 = vadd.f32 %v3888_v45, %v3858_v61  ;;  %v4876_v62 = vadd.f32 %v3617_v46, %v2136_v33 }
 0x251   : > { %3792 = vst [vmem:[%s5903_s20 + $0x98] sm:$0xff] %v4875_v25  ;;  %v3862_v20 = vmul.f32 %v4875_v25, %v4875_v25 }
 0x252   : > { %v3890_v56 = vadd.f32 %v3889_v9, %v3859_v52  ;;  %3790 = vst [vmem:[%s5903_s20 + $0x88] sm:$0xff] %v4876_v62  ;;  %v3821_v8 = vadd.f32 %v4876_v62, %v3820_v51  ;;  %v3860_v16 = vmul.f32 %v4876_v62, %v4876_v62 }
 0x253   : > { %v4639_v12 = vpop.f32.mrb[20].mxu1 }
 0x254   : > { %v3822_v14 = vadd.f32 %v4873_v3, %v3821_v8  ;;  %v3891_v15 = vadd.f32 %v3890_v56, %v3860_v16  ;;  %v4831_v10 = vpop.f32.mrb[20].mxu0  ;;  %v2149_v4 = vpop.f32.mrb[21].mxu1 }
 0x255   : > { %v4877_v24 = vadd.f32 %v4831_v10, %v4639_v12  ;;  %v3630_v43 = vpop.f32.mrb[21].mxu0  ;;  %v4640_v32 = vpop.f32.mrb[22].mxu1 }
 0x256   : > { %v3892_v21 = vadd.f32 %v3891_v15, %v3861_v13  ;;  %v4878_v34 = vadd.f32 %v3630_v43, %v2149_v4  ;;  %v3823_v18 = vadd.f32 %v4875_v25, %v3822_v14  ;;  %v4832_v37 = vpop.f32.mrb[22].mxu0  ;;  %v2152_v47 = vpop.f32.mrb[23].mxu1 }
 0x257   : > { %3795 = vst [vmem:[%s5903_s20 + $0xb0] sm:$0xff] %v4877_v24  ;;  %v4879_v22 = vadd.f32 %v4832_v37, %v4640_v32  ;;  %v3633_v30 = vpop.f32.mrb[23].mxu0  ;;  %v3865_v58 = vmul.f32 %v4877_v24, %v4877_v24 }
 0x258   : > { %3793 = vst [vmem:[%s5903_s20 + $0xa0] sm:$0xff] %v4878_v34  ;;  %v3824_v49 = vadd.f32 %v4878_v34, %v3823_v18  ;;  %v3863_v55 = vmul.f32 %v4878_v34, %v4878_v34  ;;  %v3893_v41 = vadd.f32 %v3892_v21, %v3862_v20  ;;  %v4880_v27 = vadd.f32 %v3633_v30, %v2152_v47 }
 0x259   : > { %3796 = vst [vmem:[%s5903_s20 + $0xb8] sm:$0xff] %v4879_v22  ;;  %v3866_v40 = vmul.f32 %v4879_v22, %v4879_v22 }
 0x25a   : > { %v3894_v31 = vadd.f32 %v3893_v41, %v3863_v55  ;;  %3794 = vst [vmem:[%s5903_s20 + $0xa8] sm:$0xff] %v4880_v27  ;;  %v3825_v35 = vadd.f32 %v4880_v27, %v3824_v49  ;;  %v3864_v60 = vmul.f32 %v4880_v27, %v4880_v27 }
 0x25b   : > { %v4643_v39 = vpop.f32.mrb[24].mxu1 }
 0x25c   : > { %v3826_v0 = vadd.f32 %v4877_v24, %v3825_v35  ;;  %v3895_v44 = vadd.f32 %v3894_v31, %v3864_v60  ;;  %v4835_v5 = vpop.f32.mrb[24].mxu0  ;;  %v2165_v50 = vpop.f32.mrb[25].mxu1 }
 0x25d   : > { %v4881_v28 = vadd.f32 %v4835_v5, %v4643_v39  ;;  %v3646_v48 = vpop.f32.mrb[25].mxu0  ;;  %v4644_v7 = vpop.f32.mrb[26].mxu1 }
 0x25e   : > { %v3896_v17 = vadd.f32 %v3895_v44, %v3865_v58  ;;  %v4882_v53 = vadd.f32 %v3646_v48, %v2165_v50  ;;  %v3827_v54 = vadd.f32 %v4879_v22, %v3826_v0  ;;  %v4836_v59 = vpop.f32.mrb[26].mxu0  ;;  %v2168_v11 = vpop.f32.mrb[27].mxu1 }
 0x25f   : > { %3799 = vst [vmem:[%s5903_s20 + $0xd0] sm:$0xff] %v4881_v28  ;;  %v4883_v2 = vadd.f32 %v4836_v59, %v4644_v7  ;;  %v3649_v42 = vpop.f32.mrb[27].mxu0  ;;  %v3869_v61 = vmul.f32 %v4881_v28, %v4881_v28 }
 0x260   : > { %3797 = vst [vmem:[%s5903_s20 + $0xc0] sm:$0xff] %v4882_v53  ;;  %v3828_v36 = vadd.f32 %v4882_v53, %v3827_v54  ;;  %v3867_v38 = vmul.f32 %v4882_v53, %v4882_v53  ;;  %v3897_v57 = vadd.f32 %v3896_v17, %v3866_v40  ;;  %v4884_v23 = vadd.f32 %v3649_v42, %v2168_v11 }
 0x261   : > { %3800 = vst [vmem:[%s5903_s20 + $0xd8] sm:$0xff] %v4883_v2  ;;  %v3870_v51 = vmul.f32 %v4883_v2, %v4883_v2 }
 0x262   : > { %v3898_v29 = vadd.f32 %v3897_v57, %v3867_v38  ;;  %3798 = vst [vmem:[%s5903_s20 + $0xc8] sm:$0xff] %v4884_v23  ;;  %v3829_v3 = vadd.f32 %v4884_v23, %v3828_v36  ;;  %v3868_v6 = vmul.f32 %v4884_v23, %v4884_v23 }
 0x263   : > { %v4647_v63 = vpop.f32.mrb[28].mxu1 }
 0x264   : > { %v3830_v45 = vadd.f32 %v4881_v28, %v3829_v3  ;;  %v3899_v1 = vadd.f32 %v3898_v29, %v3868_v6  ;;  %v4839_v19 = vpop.f32.mrb[28].mxu0  ;;  %v2181_v26 = vpop.f32.mrb[29].mxu1 }
 0x265   : > { %v4885_v33 = vadd.f32 %v4839_v19, %v4647_v63  ;;  %v3662_v25 = vpop.f32.mrb[29].mxu0  ;;  %v4648_v46 = vpop.f32.mrb[30].mxu1 }
 0x266   : > { %v3900_v52 = vadd.f32 %v3899_v1, %v3869_v61  ;;  %v4886_v9 = vadd.f32 %v3662_v25, %v2181_v26  ;;  %v3831_v62 = vadd.f32 %v4883_v2, %v3830_v45  ;;  %v4840_v56 = vpop.f32.mrb[30].mxu0  ;;  %v2184_v8 = vpop.f32.mrb[31].mxu1 }
 0x267   : > { %3803 = vst [vmem:[%s5903_s20 + $0xf0] sm:$0xff] %v4885_v33  ;;  %v4887_v16 = vadd.f32 %v4840_v56, %v4648_v46  ;;  %v3665_v12 = vpop.f32.mrb[31].mxu0 }
 0x268   : > { %3801 = vst [vmem:[%s5903_s20 + $0xe0] sm:$0xff] %v4886_v9  ;;  %v3832_v13 = vadd.f32 %v4886_v9, %v3831_v62  ;;  %v3871_v14 = vmul.f32 %v4886_v9, %v4886_v9  ;;  %v3901_v15 = vadd.f32 %v3900_v52, %v3870_v51  ;;  %v4888_v10 = vadd.f32 %v3665_v12, %v2184_v8 }
 0x269   : > { %3804 = vst [vmem:[%s5903_s20 + $0xf8] sm:$0xff] %v4887_v16 }
 0x26a   : > { %v3902_v4 = vadd.f32 %v3901_v15, %v3871_v14  ;;  %3802 = vst [vmem:[%s5903_s20 + $0xe8] sm:$0xff] %v4888_v10  ;;  %v3833_v24 = vadd.f32 %v4888_v10, %v3832_v13  ;;  %v3872_v43 = vmul.f32 %v4888_v10, %v4888_v10 }
 0x26b   : > { %5342 = shalt.err (!%p5339_p7)
}
 0x26c   : > { %s5343_s26 = scalar_lea.hbm %s5944_s4, 4096  ;;  %s5347_s10 = scalar_lea.hbm %s6026_s2, 8192 }
 0x26d   : > { %p5344_p9 = scmp.ne.s32.totalorder %s5944_s4, %s5343_s26  ;;  %p5348_p5 = scmp.lt.u32.totalorder %s5944_s4, %s6026_s2 }
 0x26e   : > { %p5349_p13 = scmp.lt.u32.totalorder %s5347_s10, %s5343_s26  ;;  %p5351_p4 = scmp.lt.u32.totalorder %s5343_s26, %s5944_s4 }
 0x26f   : > { %p5345_p1 = pnand %p5344_p9, %p5555_p12 }
 0x270   : > { %p5350_p2 = por %p5349_p13, %p5348_p5 }
 0x271   : > { %p5346_p0 = pneg %p5345_p1 }
 0x272   : > { %p5352_p6 = por %p5351_p4, %p5350_p2 }
 0x274   : > { %p5353_p8 = pnand %p5352_p6, %p5346_p0 }
 0x276   : > { %5356 = shalt.err (!%p5353_p8)
}
 0x277   : > { %s5438_s20 = smov 128   ;;  %s5439_s8 = smov 8   ;;  %v3873_v32 = vmul.f32 %v4885_v33, %v4885_v33  ;;  %v3834_v20 = vadd.f32 %v4885_v33, %v3833_v24  ;;  %v3903_v21 = vadd.f32 %v3902_v4, %v3872_v43  ;;  %v3874_v34 = vmul.f32 %v4887_v16, %v4887_v16 }
 0x278   : > { %5122 = dma.vmem_to_hbm [thread:$0]  (%p5555_p12), %s5946_s9, 4096, %s5944_s4, %s3914_s5, %s5438_s20, %s5438_s20, %s5439_s8  }
 0x279   : > { %v3835_v18 = vadd.f32 %v4887_v16, %v3834_v20  ;;  %v3904_v37 = vadd.f32 %v3903_v21, %v3873_v32  ;;  %s4068_s29 = sshll.u32 %s5606_s6, 1  ;;  %s4145_s9 = sshll.u32 %s5482_s16, 5 }
 0x27a   : > { %s214_s25 = scalar_lea.vmem [#allocation10], %s4068_s29  ;;  %s5980_s22 = scalar_lea.hbm %s6027_s3, %s4145_s9 }
 0x27b   : > { %v3836_v47 = vrot.slane %v3835_v18, 4  ;;  %v3905_v22 = vadd.f32 %v3904_v37, %v3874_v34  ;;  %s3948_s4 = sshll.u32 %s214_s25, 4  ;;  %s3919_s23 = scalar_lea.sflag [#allocation11], %s5606_s6  ;;  %s5982_s4 = int_to_ptr.vmem [resolvable:$true] %s3948_s4 }
 0x27c   : > { %s5357_s28 = scalar_lea.vmem %s5982_s4, 32  ;;  %s5440_s16 = smov [#allocation10]  }
 0x27d   : > { %v3837_v30 = vadd.f32 %v3836_v47, %v3835_v18  ;;  %v3906_v49 = vrot.slane %v3905_v22, 4  ;;  %p5358_p10 = scmp.ne.s32.totalorder %s5982_s4, %s5357_s28  ;;  %s5361_s26 = sshll.u32 %s5440_s16, 4  ;;  %s5362_s26 = int_to_ptr.vmem [resolvable:$false] %s5361_s26 }
 0x27e   : > { %s5363_s30 = scalar_lea.vmem %s5362_s26, 64  ;;  %p5364_p7 = scmp.lt.s32.totalorder %s5982_s4, %s5362_s26 }
 0x27f   : > { %v3838_v55 = vrot.slane %v3837_v30, 2  ;;  %v3907_v41 = vadd.f32 %v3906_v49, %v3905_v22  ;;  %p5359_p11 = pnand %p5358_p10, %p5555_p12  ;;  %p5365_p9 = scmp.lt.s32.totalorder %s5363_s30, %s5357_s28 }
 0x281   : > { %v3839_v27 = vadd.f32 %v3838_v55, %v3837_v30  ;;  %v3908_v31 = vrot.slane %v3907_v41, 2  ;;  %p5360_p3 = pneg %p5359_p11  ;;  %p5366_p1 = por %p5365_p9, %p5364_p7 }
 0x283   : > { %v3840_v35 = vrot.slane %v3839_v27, 1  ;;  %v3909_v60 = vadd.f32 %v3908_v31, %v3907_v41  ;;  %p5367_p0 = pnand %p5366_p1, %p5360_p3 }
 0x285   : > { %v3841_v39 = vadd.f32 %v3840_v35, %v3839_v27  ;;  %v3910_v58 = vrot.slane %v3909_v60, 1 }
 0x287   : > { %3842 = vst [vmem:[%s214_s25] sm:$0x1] %v3841_v39  ;;  %v3911_v0 = vadd.f32 %v3910_v58, %v3909_v60 }
 0x289   : > { %3912 = vst [vmem:[%s214_s25 + $0x1] sm:$0x1] %v3911_v0 }
 0x28a   : > { %5370 = shalt.err (!%p5367_p0)
}
 0x28b   : > { %s5371_s6 = scalar_lea.hbm %s5980_s22, 32  ;;  %s5375_s11 = scalar_lea.hbm %s6027_s3, 64 }
 0x28c   : > { %p5372_p5 = scmp.ne.s32.totalorder %s5980_s22, %s5371_s6  ;;  %p5376_p4 = scmp.lt.u32.totalorder %s5980_s22, %s6027_s3 }
 0x28d   : > { %p5377_p6 = scmp.lt.u32.totalorder %s5375_s11, %s5371_s6  ;;  %p5379_p10 = scmp.lt.u32.totalorder %s5371_s6, %s5980_s22 }
 0x28e   : > { %p5373_p13 = pnand %p5372_p5, %p5555_p12 }
 0x28f   : > { %p5378_p8 = por %p5377_p6, %p5376_p4 }
 0x290   : > { %p5374_p2 = pneg %p5373_p13 }
 0x291   : > { %p5380_p11 = por %p5379_p10, %p5378_p8 }
 0x293   : > { %p5381_p3 = pnand %p5380_p11, %p5374_p2 }
 0x295   : > { %5384 = shalt.err (!%p5381_p3)
}
 0x296   : > { %5123 = dma.vmem_to_hbm [thread:$0]  (%p5555_p12), %s5982_s4, 32, %s5980_s22, %s3919_s23  }
 0x297 PF: > { %s3960_s8 = sand.u32 1, %s5419_s12   ;;  %p6042_p7 = scmp.ne.s32.totalorder %s6032_s19, 0 }
 0x298   : > { %p6043_p9 = scmp.ge.s32.totalorder %s5431_s15, 2  ;;  %s3961_s29 = scalar_lea.sflag [#allocation6], %s3960_s8 }
 0x29a   : > { %p5135_p1 = pnand %p6043_p9, %p6042_p7 }
 0x29c   : > { %5410 = dma.done.wait (!%p5135_p1), %s3961_s29, 4096  }
 0x29d   : > { %5412 = vsyncadd (!%p5135_p1), %s3961_s29, 4294963200  ;;  %s3970_s9 = scalar_lea.sflag [#allocation11], %s3960_s8 }
 0x29e   : > { %5414 = dma.done.wait (!%p5135_p1), %s3970_s9, 32  }
 0x29f   : > { %5416 = vsyncadd (!%p5135_p1), %s3970_s9, 4294967264  ;;  %p21_p12 = scmp.ge.s32.totalorder %s5517_s24, 4   ;;  %s6044_s12 = smov %s5423_s13 }
 0x2a0   : > { %s6045_s13 = smov %s5427_s14  ;;  %s6046_s14 = smov %s5551_s17 }
 0x2a1   : > { %s6047_s15 = smov %s5517_s24  ;;  %23 = sbr.rel (!%p21_p12) target bundleno = 8 (0x8), region = 104 }
 0x2a8   :  { %3975 = vsyncpa [#allocation5], 1 }
 0x2a9   :  { %3977 = vsyncpa [#allocation5 + $0x1], 1 }
 0x2aa   :  { %3978 = vsyncpa [#allocation8], 1 }
 0x2ab   :  { %3979 = vsyncpa [#allocation6], 1 }
 0x2ac   :  { %3981 = vsyncpa [#allocation6 + $0x1], 1 }
 0x2ad   :  { %3982 = vsyncpa [#allocation11], 1 }
 0x2ae   :  { %3984 = vsyncpa [#allocation11 + $0x1], 1 }

</bundles_post_ra>
